<compile_context>
chip_gen: v7x
topology: tpu7x:2x2x1
jax: 0.10.0
libtpu: 0.0.40
codegen_flags: <defaults>
</compile_context>

<pallas_src>
import jax
import jax.numpy as jnp
from jax.experimental import pallas as pl
from jax.experimental.pallas import tpu as pltpu


def _make_kernel(bt, th, w, c, f, hw):
    """Builds the kernel body with static shape parameters baked in."""

    def kernel(xch_ref, wtap_ref, wfc_ref, bfc_ref, out_ref, acc_ref):
        # xch_ref : (1, Bt, Th+2, W+2, C) f32  zero-padded NHWC image row-chunk
        # wtap_ref: (9, C, F)  f32  frozen conv weights, tap-major (dh, dw)
        # wfc_ref : (F, NCp)   f32  fc weight, transposed + lane-padded
        # bfc_ref : (1, NCp)   f32  fc bias, lane-padded
        # out_ref : (Bt, NCp)  f32  logits for this batch block
        # acc_ref : (Bt, F)    f32  VMEM scratch: running spatial sum (GAP numerator)
        hi = pl.program_id(1)

        @pl.when(hi == 0)
        def _():
            acc_ref[...] = jnp.zeros_like(acc_ref)

        x = xch_ref[0]                                            # (Bt, Th+2, W+2, C)

        # --- Conv2d(3x3, pad=1) as 9 accumulated MXU matmuls (in-kernel im2col) ---
        conv = jnp.zeros((bt * th * w, f), dtype=jnp.float32)
        for dh in range(3):
            for dw in range(3):
                tap = x[:, dh:dh + th, dw:dw + w, :].reshape(bt * th * w, c)
                conv = conv + jnp.dot(tap, wtap_ref[dh * 3 + dw],
                                      preferred_element_type=jnp.float32)

        act = jnp.maximum(conv, 0.0)                              # ReLU (VPU)

        # --- Partial global-average-pool: accumulate this chunk's spatial sum ---
        acc_ref[...] += jnp.sum(act.reshape(bt, th * w, f), axis=1)   # (Bt, F)

        # --- Finalize: 1/HW scale in f32, classifier head, one lane-dense store ---
        @pl.when(hi == pl.num_programs(1) - 1)
        def _():
            feat = acc_ref[...] * (1.0 / hw)                      # (Bt, F)
            logits = jnp.dot(feat, wfc_ref[...],
                             preferred_element_type=jnp.float32) + bfc_ref[...]
            out_ref[...] = logits.astype(out_ref.dtype)

    return kernel


def _num_batch_blocks(batch):
    # Keep a leading "parallel" axis so dual-TensorCore chips (v7x) shard the batch;
    # only split when each block's sublane dim stays (8,128)-legal.
    # TODO(synk): at realistic batch sizes, pad B up to a multiple of 16 so both
    # v7x TensorCores always get work even for odd batches.
    if batch % 2 == 0 and (batch // 2) % 8 == 0:
        return 2
    return 1


def _pick_row_chunk(h, w, c, f, bt, row_chunk):
    if row_chunk is not None:
        th = min(h, row_chunk)
    else:
        # ~2 MiB of f32 conv activation per chunk leaves room for double-buffered
        # inputs within the scoped-VMEM limit on every generation (incl. v7x 64 MiB).
        budget = 2 * 1024 * 1024
        th = max(1, min(h, budget // max(1, bt * w * f * 4)))
    while h % th:
        th -= 1
    return th


def fine_tune_forward(x_nchw, w_conv, w_fc, b_fc, *, row_chunk=None):
    """x_nchw: (B, Cin, H, W); w_conv: (F, Cin, 3, 3); w_fc: (NC, F); b_fc: (NC,)."""
    b, c, h, w = x_nchw.shape
    f = w_conv.shape[0]
    nc = w_fc.shape[0]
    hw = h * w

    n_b = _num_batch_blocks(b)
    bt = b // n_b
    th = _pick_row_chunk(h, w, c, f, bt, row_chunk)
    n_h = h // th

    ncp = ((nc + 127) // 128) * 128          # lane-dense output => unmasked stores

    # ---- glue (plain JAX): NHWC + zero-pad + halo'd row chunks ------------------
    x_nhwc = jnp.transpose(x_nchw, (0, 2, 3, 1)).astype(jnp.float32)   # (B, H, W, C)
    xp = jnp.pad(x_nhwc, ((0, 0), (1, 1), (1, 1), (0, 0)))             # (B, H+2, W+2, C)
    # Overlapping (2-row halo) chunks so each grid step's input is a plain Blocked tile.
    # TODO(synk): at realistic image sizes, DMA halo windows manually
    # (memory_space=pl.ANY + pltpu.make_async_copy) instead of duplicating halo rows.
    xch = jnp.stack([xp[:, i * th: i * th + th + 2, :, :] for i in range(n_h)],
                    axis=0)                                            # (n_h, B, Th+2, W+2, C)

    # Frozen conv weight, tap-major: w_taps[dh*3+dw, c, f] = w_conv[f, c, dh, dw].
    w_taps = jnp.transpose(w_conv, (2, 3, 1, 0)).reshape(9, c, f).astype(jnp.float32)

    # Classifier head operands (lane dim padded to a multiple of 128).
    wfc_p = jnp.zeros((f, ncp), jnp.float32).at[:, :nc].set(jnp.transpose(w_fc))
    bfc_p = jnp.zeros((1, ncp), jnp.float32).at[0, :nc].set(b_fc.astype(jnp.float32))

    cost = pl.CostEstimate(
        flops=(2 * b * hw * (9 * c) * f        # conv matmuls
               + 2 * b * hw * f                # ReLU + pooling adds
               + 2 * b * f * ncp),             # fc head
        transcendentals=0,
        bytes_accessed=(xch.size + w_taps.size + wfc_p.size + bfc_p.size + b * ncp) * 4,
    )

    grid_spec = pltpu.PrefetchScalarGridSpec(
        num_scalar_prefetch=0,
        grid=(n_b, n_h),
        in_specs=[
            pl.BlockSpec((1, bt, th + 2, w + 2, c),
                         lambda bi, hi: (hi, bi, 0, 0, 0)),            # image row-chunk
            pl.BlockSpec((9, c, f), lambda bi, hi: (0, 0, 0)),         # conv weights (resident)
            pl.BlockSpec((f, ncp), lambda bi, hi: (0, 0)),             # fc weight (resident)
            pl.BlockSpec((1, ncp), lambda bi, hi: (0, 0)),             # fc bias (resident)
        ],
        out_specs=pl.BlockSpec((bt, ncp), lambda bi, hi: (bi, 0)),
        scratch_shapes=[pltpu.VMEM((bt, f), jnp.float32)],
    )

    out_p = pl.pallas_call(
        _make_kernel(bt, th, w, c, f, hw),
        out_shape=jax.ShapeDtypeStruct((b, ncp), jnp.float32),
        grid_spec=grid_spec,
        compiler_params=pltpu.CompilerParams(
            dimension_semantics=("parallel", "arbitrary"),
            vmem_limit_bytes=32 * 1024 * 1024,
        ),
        cost_estimate=cost,
    )(xch, w_taps, wfc_p, bfc_p)

    return out_p[:, :nc]


def _reference_forward(x_nchw, w_conv, w_fc, b_fc):
    """Pure-JAX f32 reference: conv3x3(pad=1) -> ReLU -> GAP -> Linear."""
    conv = jax.lax.conv_general_dilated(
        x_nchw, w_conv, window_strides=(1, 1), padding="SAME",
        dimension_numbers=("NCHW", "OIHW", "NCHW"))
    act = jnp.maximum(conv, 0.0)
    feat = jnp.mean(act, axis=(2, 3))        # (B, F)
    return feat @ w_fc.T + b_fc


if __name__ == "__main__":
    B, C_IN, H, W = 2, 3, 16, 16
    F_ENC = 32          # encoder_output_size
    NUM_CLASSES = 8

    key = jax.random.PRNGKey(0)
    kx, kc, kw, kb = jax.random.split(key, 4)

    x = jax.random.normal(kx, (B, C_IN, H, W), dtype=jnp.float32)
    # Frozen encoder conv weights.
    w_conv = jax.random.normal(kc, (F_ENC, C_IN, 3, 3), dtype=jnp.float32) * 0.1
    # Trainable fc head: Linear(F_ENC, NUM_CLASSES).
    w_fc = jax.random.normal(kw, (NUM_CLASSES, F_ENC), dtype=jnp.float32) * 0.1
    b_fc = jax.random.normal(kb, (NUM_CLASSES,), dtype=jnp.float32) * 0.1

    # row_chunk=8 -> two spatial chunks, exercising the accumulate/finalize path.
    out = fine_tune_forward(x, w_conv, w_fc, b_fc, row_chunk=8)
    out = jax.block_until_ready(out)

    ref = _reference_forward(x, w_conv, w_fc, b_fc)
    assert out.shape == (B, NUM_CLASSES)
    assert jnp.allclose(out, ref, atol=1e-2, rtol=1e-2), (out, ref)

    print("KERNEL_OK")
</pallas_src>

<mosaic_0001>
module attributes {stable_mosaic.version = 11 : i64} {
  func.func @kernel(%arg0: i32, %arg1: i32, %arg2: memref<1x2x10x18x3xf32, #tpu.memory_space<vmem>>, %arg3: memref<9x3x32xf32, #tpu.memory_space<vmem>>, %arg4: memref<32x128xf32, #tpu.memory_space<vmem>>, %arg5: memref<1x128xf32, #tpu.memory_space<vmem>>, %arg6: memref<2x128xf32, #tpu.memory_space<vmem>>, %arg7: memref<2x32xf32, #tpu.memory_space<vmem>>) attributes {dimension_semantics = [#tpu.dimension_semantics<parallel>, #tpu.dimension_semantics<arbitrary>], iteration_bounds = array<i64: 1, 2>, scalar_prefetch = 0 : i64, scratch_operands = 1 : i64, tpu.core_type = #tpu.core_type<tc>, window_params = [{transform_indices = @transform_0, window_bounds = array<i64: 1, 2, 10, 18, 3>}, {pipeline_mode = #tpu.pipeline_mode<synchronous>, transform_indices = @transform_1, window_bounds = array<i64: 9, 3, 32>}, {pipeline_mode = #tpu.pipeline_mode<synchronous>, transform_indices = @transform_2, window_bounds = array<i64: 32, 128>}, {pipeline_mode = #tpu.pipeline_mode<synchronous>, transform_indices = @transform_3, window_bounds = array<i64: 1, 128>}, {transform_indices = @transform_4, window_bounds = array<i64: 2, 128>}]} {
    %c0_i32 = arith.constant 0 : i32
    %0 = arith.cmpi eq, %arg1, %c0_i32 : i32
    %1 = arith.extui %0 : i1 to i32
    %c0_i32_0 = arith.constant 0 : i32
    %2 = arith.cmpi ne, %1, %c0_i32_0 : i32
    scf.if %2 {
      %cst_40 = arith.constant 0.000000e+00 : f32
      %70 = vector.broadcast %cst_40 : f32 to vector<2x32xf32>
      %c0_41 = arith.constant 0 : index
      %c0_42 = arith.constant 0 : index
      %71 = vector.load %arg7[%c0_41, %c0_42] : memref<2x32xf32, #tpu.memory_space<vmem>>, vector<2x32xf32>
      tpu.vector_store %arg7[%c0_41, %c0_42], %70 {strides = array<i32>} : memref<2x32xf32, #tpu.memory_space<vmem>>, vector<2x32xf32>,
    } else {
    }
    %c0 = arith.constant 0 : index
    %c0_1 = arith.constant 0 : index
    %c0_2 = arith.constant 0 : index
    %c0_3 = arith.constant 0 : index
    %c0_4 = arith.constant 0 : index
    %3 = vector.load %arg2[%c0, %c0_1, %c0_2, %c0_3, %c0_4] : memref<1x2x10x18x3xf32, #tpu.memory_space<vmem>>, vector<1x2x10x18x3xf32>
    %4 = vector.shape_cast %3 : vector<1x2x10x18x3xf32> to vector<2x10x18x3xf32>
    %cst = arith.constant 0.000000e+00 : f32
    %5 = vector.broadcast %cst : f32 to vector<256x32xf32>
    %6 = vector.extract_strided_slice %4 {offsets = [0, 0, 0, 0], sizes = [2, 8, 16, 3], strides = [1, 1, 1, 1]} : vector<2x10x18x3xf32> to vector<2x8x16x3xf32>
    %7 = vector.shape_cast %6 : vector<2x8x16x3xf32> to vector<256x3xf32>
    %c0_5 = arith.constant 0 : index
    %c0_6 = arith.constant 0 : index
    %c0_7 = arith.constant 0 : index
    %8 = vector.load %arg3[%c0_5, %c0_6, %c0_7] : memref<9x3x32xf32, #tpu.memory_space<vmem>>, vector<1x3x32xf32>
    %9 = vector.shape_cast %8 : vector<1x3x32xf32> to vector<3x32xf32>
    %cst_8 = arith.constant dense<0.000000e+00> : vector<256x32xf32>
    %10 = tpu.matmul %7, %9, %cst_8 {dimension_numbers = #tpu.dot_dimension_numbers<[1], [0], [0], [1], [0, 0, 1, 1], [], []>} : vector<256x3xf32>, vector<3x32xf32>, vector<256x32xf32> -> vector<256x32xf32>
    %11 = arith.addf %5, %10 : vector<256x32xf32>
    %12 = vector.extract_strided_slice %4 {offsets = [0, 0, 1, 0], sizes = [2, 8, 16, 3], strides = [1, 1, 1, 1]} : vector<2x10x18x3xf32> to vector<2x8x16x3xf32>
    %13 = vector.shape_cast %12 : vector<2x8x16x3xf32> to vector<256x3xf32>
    %c1 = arith.constant 1 : index
    %c0_9 = arith.constant 0 : index
    %c0_10 = arith.constant 0 : index
    %14 = vector.load %arg3[%c1, %c0_9, %c0_10] : memref<9x3x32xf32, #tpu.memory_space<vmem>>, vector<1x3x32xf32>
    %15 = vector.shape_cast %14 : vector<1x3x32xf32> to vector<3x32xf32>
    %cst_11 = arith.constant dense<0.000000e+00> : vector<256x32xf32>
    %16 = tpu.matmul %13, %15, %cst_11 {dimension_numbers = #tpu.dot_dimension_numbers<[1], [0], [0], [1], [0, 0, 1, 1], [], []>} : vector<256x3xf32>, vector<3x32xf32>, vector<256x32xf32> -> vector<256x32xf32>
    %17 = arith.addf %11, %16 : vector<256x32xf32>
    %18 = vector.extract_strided_slice %4 {offsets = [0, 0, 2, 0], sizes = [2, 8, 16, 3], strides = [1, 1, 1, 1]} : vector<2x10x18x3xf32> to vector<2x8x16x3xf32>
    %19 = vector.shape_cast %18 : vector<2x8x16x3xf32> to vector<256x3xf32>
    %c2 = arith.constant 2 : index
    %c0_12 = arith.constant 0 : index
    %c0_13 = arith.constant 0 : index
    %20 = vector.load %arg3[%c2, %c0_12, %c0_13] : memref<9x3x32xf32, #tpu.memory_space<vmem>>, vector<1x3x32xf32>
    %21 = vector.shape_cast %20 : vector<1x3x32xf32> to vector<3x32xf32>
    %cst_14 = arith.constant dense<0.000000e+00> : vector<256x32xf32>
    %22 = tpu.matmul %19, %21, %cst_14 {dimension_numbers = #tpu.dot_dimension_numbers<[1], [0], [0], [1], [0, 0, 1, 1], [], []>} : vector<256x3xf32>, vector<3x32xf32>, vector<256x32xf32> -> vector<256x32xf32>
    %23 = arith.addf %17, %22 : vector<256x32xf32>
    %24 = vector.extract_strided_slice %4 {offsets = [0, 1, 0, 0], sizes = [2, 8, 16, 3], strides = [1, 1, 1, 1]} : vector<2x10x18x3xf32> to vector<2x8x16x3xf32>
    %25 = vector.shape_cast %24 : vector<2x8x16x3xf32> to vector<256x3xf32>
    %c3 = arith.constant 3 : index
    %c0_15 = arith.constant 0 : index
    %c0_16 = arith.constant 0 : index
    %26 = vector.load %arg3[%c3, %c0_15, %c0_16] : memref<9x3x32xf32, #tpu.memory_space<vmem>>, vector<1x3x32xf32>
    %27 = vector.shape_cast %26 : vector<1x3x32xf32> to vector<3x32xf32>
    %cst_17 = arith.constant dense<0.000000e+00> : vector<256x32xf32>
    %28 = tpu.matmul %25, %27, %cst_17 {dimension_numbers = #tpu.dot_dimension_numbers<[1], [0], [0], [1], [0, 0, 1, 1], [], []>} : vector<256x3xf32>, vector<3x32xf32>, vector<256x32xf32> -> vector<256x32xf32>
    %29 = arith.addf %23, %28 : vector<256x32xf32>
    %30 = vector.extract_strided_slice %4 {offsets = [0, 1, 1, 0], sizes = [2, 8, 16, 3], strides = [1, 1, 1, 1]} : vector<2x10x18x3xf32> to vector<2x8x16x3xf32>
    %31 = vector.shape_cast %30 : vector<2x8x16x3xf32> to vector<256x3xf32>
    %c4 = arith.constant 4 : index
    %c0_18 = arith.constant 0 : index
    %c0_19 = arith.constant 0 : index
    %32 = vector.load %arg3[%c4, %c0_18, %c0_19] : memref<9x3x32xf32, #tpu.memory_space<vmem>>, vector<1x3x32xf32>
    %33 = vector.shape_cast %32 : vector<1x3x32xf32> to vector<3x32xf32>
    %cst_20 = arith.constant dense<0.000000e+00> : vector<256x32xf32>
    %34 = tpu.matmul %31, %33, %cst_20 {dimension_numbers = #tpu.dot_dimension_numbers<[1], [0], [0], [1], [0, 0, 1, 1], [], []>} : vector<256x3xf32>, vector<3x32xf32>, vector<256x32xf32> -> vector<256x32xf32>
    %35 = arith.addf %29, %34 : vector<256x32xf32>
    %36 = vector.extract_strided_slice %4 {offsets = [0, 1, 2, 0], sizes = [2, 8, 16, 3], strides = [1, 1, 1, 1]} : vector<2x10x18x3xf32> to vector<2x8x16x3xf32>
    %37 = vector.shape_cast %36 : vector<2x8x16x3xf32> to vector<256x3xf32>
    %c5 = arith.constant 5 : index
    %c0_21 = arith.constant 0 : index
    %c0_22 = arith.constant 0 : index
    %38 = vector.load %arg3[%c5, %c0_21, %c0_22] : memref<9x3x32xf32, #tpu.memory_space<vmem>>, vector<1x3x32xf32>
    %39 = vector.shape_cast %38 : vector<1x3x32xf32> to vector<3x32xf32>
    %cst_23 = arith.constant dense<0.000000e+00> : vector<256x32xf32>
    %40 = tpu.matmul %37, %39, %cst_23 {dimension_numbers = #tpu.dot_dimension_numbers<[1], [0], [0], [1], [0, 0, 1, 1], [], []>} : vector<256x3xf32>, vector<3x32xf32>, vector<256x32xf32> -> vector<256x32xf32>
    %41 = arith.addf %35, %40 : vector<256x32xf32>
    %42 = vector.extract_strided_slice %4 {offsets = [0, 2, 0, 0], sizes = [2, 8, 16, 3], strides = [1, 1, 1, 1]} : vector<2x10x18x3xf32> to vector<2x8x16x3xf32>
    %43 = vector.shape_cast %42 : vector<2x8x16x3xf32> to vector<256x3xf32>
    %c6 = arith.constant 6 : index
    %c0_24 = arith.constant 0 : index
    %c0_25 = arith.constant 0 : index
    %44 = vector.load %arg3[%c6, %c0_24, %c0_25] : memref<9x3x32xf32, #tpu.memory_space<vmem>>, vector<1x3x32xf32>
    %45 = vector.shape_cast %44 : vector<1x3x32xf32> to vector<3x32xf32>
    %cst_26 = arith.constant dense<0.000000e+00> : vector<256x32xf32>
    %46 = tpu.matmul %43, %45, %cst_26 {dimension_numbers = #tpu.dot_dimension_numbers<[1], [0], [0], [1], [0, 0, 1, 1], [], []>} : vector<256x3xf32>, vector<3x32xf32>, vector<256x32xf32> -> vector<256x32xf32>
    %47 = arith.addf %41, %46 : vector<256x32xf32>
    %48 = vector.extract_strided_slice %4 {offsets = [0, 2, 1, 0], sizes = [2, 8, 16, 3], strides = [1, 1, 1, 1]} : vector<2x10x18x3xf32> to vector<2x8x16x3xf32>
    %49 = vector.shape_cast %48 : vector<2x8x16x3xf32> to vector<256x3xf32>
    %c7 = arith.constant 7 : index
    %c0_27 = arith.constant 0 : index
    %c0_28 = arith.constant 0 : index
    %50 = vector.load %arg3[%c7, %c0_27, %c0_28] : memref<9x3x32xf32, #tpu.memory_space<vmem>>, vector<1x3x32xf32>
    %51 = vector.shape_cast %50 : vector<1x3x32xf32> to vector<3x32xf32>
    %cst_29 = arith.constant dense<0.000000e+00> : vector<256x32xf32>
    %52 = tpu.matmul %49, %51, %cst_29 {dimension_numbers = #tpu.dot_dimension_numbers<[1], [0], [0], [1], [0, 0, 1, 1], [], []>} : vector<256x3xf32>, vector<3x32xf32>, vector<256x32xf32> -> vector<256x32xf32>
    %53 = arith.addf %47, %52 : vector<256x32xf32>
    %54 = vector.extract_strided_slice %4 {offsets = [0, 2, 2, 0], sizes = [2, 8, 16, 3], strides = [1, 1, 1, 1]} : vector<2x10x18x3xf32> to vector<2x8x16x3xf32>
    %55 = vector.shape_cast %54 : vector<2x8x16x3xf32> to vector<256x3xf32>
    %c8 = arith.constant 8 : index
    %c0_30 = arith.constant 0 : index
    %c0_31 = arith.constant 0 : index
    %56 = vector.load %arg3[%c8, %c0_30, %c0_31] : memref<9x3x32xf32, #tpu.memory_space<vmem>>, vector<1x3x32xf32>
    %57 = vector.shape_cast %56 : vector<1x3x32xf32> to vector<3x32xf32>
    %cst_32 = arith.constant dense<0.000000e+00> : vector<256x32xf32>
    %58 = tpu.matmul %55, %57, %cst_32 {dimension_numbers = #tpu.dot_dimension_numbers<[1], [0], [0], [1], [0, 0, 1, 1], [], []>} : vector<256x3xf32>, vector<3x32xf32>, vector<256x32xf32> -> vector<256x32xf32>
    %59 = arith.addf %53, %58 : vector<256x32xf32>
    %cst_33 = arith.constant 0.000000e+00 : f32
    %60 = vector.broadcast %cst_33 : f32 to vector<256x32xf32>
    %61 = arith.maximumf %59, %60 : vector<256x32xf32>
    %c0_34 = arith.constant 0 : index
    %c0_35 = arith.constant 0 : index
    %62 = vector.load %arg7[%c0_34, %c0_35] : memref<2x32xf32, #tpu.memory_space<vmem>>, vector<2x32xf32>
    %63 = vector.shape_cast %61 : vector<256x32xf32> to vector<2x128x32xf32>
    %cst_36 = arith.constant dense<0.000000e+00> : vector<2x32xf32>
    %64 = vector.multi_reduction <add>, %63, %cst_36 [1] : vector<2x128x32xf32> to vector<2x32xf32>
    %65 = arith.addf %62, %64 : vector<2x32xf32>
    %c0_37 = arith.constant 0 : index
    %c0_38 = arith.constant 0 : index
    %66 = vector.load %arg7[%c0_37, %c0_38] : memref<2x32xf32, #tpu.memory_space<vmem>>, vector<2x32xf32>
    tpu.vector_store %arg7[%c0_37, %c0_38], %65 {strides = array<i32>} : memref<2x32xf32, #tpu.memory_space<vmem>>, vector<2x32xf32>,
    %c1_i32 = arith.constant 1 : i32
    %67 = arith.cmpi eq, %arg1, %c1_i32 : i32
    %68 = arith.extui %67 : i1 to i32
    %c0_i32_39 = arith.constant 0 : i32
    %69 = arith.cmpi ne, %68, %c0_i32_39 : i32
    scf.if %69 {
      %c0_40 = arith.constant 0 : index
      %c0_41 = arith.constant 0 : index
      %70 = vector.load %arg7[%c0_40, %c0_41] : memref<2x32xf32, #tpu.memory_space<vmem>>, vector<2x32xf32>
      %cst_42 = arith.constant 3.906250e-03 : f32
      %71 = vector.broadcast %cst_42 : f32 to vector<2x32xf32>
      %72 = arith.mulf %70, %71 : vector<2x32xf32>
      %c0_43 = arith.constant 0 : index
      %c0_44 = arith.constant 0 : index
      %73 = vector.load %arg4[%c0_43, %c0_44] : memref<32x128xf32, #tpu.memory_space<vmem>>, vector<32x128xf32>
      %cst_45 = arith.constant dense<0.000000e+00> : vector<2x128xf32>
      %74 = tpu.matmul %72, %73, %cst_45 {dimension_numbers = #tpu.dot_dimension_numbers<[1], [0], [0], [1], [0, 0, 1, 1], [], []>} : vector<2x32xf32>, vector<32x128xf32>, vector<2x128xf32> -> vector<2x128xf32>
      %c0_46 = arith.constant 0 : index
      %c0_47 = arith.constant 0 : index
      %75 = vector.load %arg5[%c0_46, %c0_47] : memref<1x128xf32, #tpu.memory_space<vmem>>, vector<1x128xf32>
      %76 = vector.broadcast %75 : vector<1x128xf32> to vector<2x128xf32>
      %77 = arith.addf %74, %76 : vector<2x128xf32>
      %c0_48 = arith.constant 0 : index
      %c0_49 = arith.constant 0 : index
      %78 = vector.load %arg6[%c0_48, %c0_49] : memref<2x128xf32, #tpu.memory_space<vmem>>, vector<2x128xf32>
      tpu.vector_store %arg6[%c0_48, %c0_49], %77 {strides = array<i32>} : memref<2x128xf32, #tpu.memory_space<vmem>>, vector<2x128xf32>,
    } else {
    }
    return
  }
  func.func @transform_0(%arg0: i32, %arg1: i32) -> (i32, i32, i32, i32, i32) {
    %c0_i32 = arith.constant 0 : i32
    %c0_i32_0 = arith.constant 0 : i32
    %c0_i32_1 = arith.constant 0 : i32
    %c0_i32_2 = arith.constant 0 : i32
    return %arg1, %arg0, %c0_i32, %c0_i32_0, %c0_i32_1 : i32, i32, i32, i32, i32
  }
  func.func @transform_1(%arg0: i32, %arg1: i32) -> (i32, i32, i32) {
    %c0_i32 = arith.constant 0 : i32
    %c0_i32_0 = arith.constant 0 : i32
    %c0_i32_1 = arith.constant 0 : i32
    %c0_i32_2 = arith.constant 0 : i32
    return %c0_i32, %c0_i32_0, %c0_i32_1 : i32, i32, i32
  }
  func.func @transform_2(%arg0: i32, %arg1: i32) -> (i32, i32) {
    %c0_i32 = arith.constant 0 : i32
    %c0_i32_0 = arith.constant 0 : i32
    %c0_i32_1 = arith.constant 0 : i32
    return %c0_i32, %c0_i32_0 : i32, i32
  }
  func.func @transform_3(%arg0: i32, %arg1: i32) -> (i32, i32) {
    %c0_i32 = arith.constant 0 : i32
    %c0_i32_0 = arith.constant 0 : i32
    %c0_i32_1 = arith.constant 0 : i32
    return %c0_i32, %c0_i32_0 : i32, i32
  }
  func.func @transform_4(%arg0: i32, %arg1: i32) -> (i32, i32) {
    %c0_i32 = arith.constant 0 : i32
    %c0_i32_0 = arith.constant 0 : i32
    return %arg0, %c0_i32 : i32, i32
  }
}

</mosaic_0001>

<bundles_post_ra>
// kernel: tpu_custom_call.1
= control target key start
LH: loop header
LB: loop body
LE: loop exit
PB: predicated region body
PF: predicated region fallthrough
CT: control target
= control target key end

     0   :  { %9 = vsyncpa [#allocation4], 0  ;;  %s4823_s15 = smov 0   ;;  %s4825_s16 = smov 0   ;;  %s6084_s0 = inlined_call_operand.vmem [shape: f32[2,2,10,18,3], index: 0, kind: input, shape index: {}]   ;;  %s6085_s1 = inlined_call_operand.vmem [shape: f32[9,3,32], index: 1, kind: input, shape index: {}]   ;;  %s6086_s2 = inlined_call_operand.vmem [shape: f32[32,128], index: 2, kind: input, shape index: {}]   ;;  %s6087_s3 = inlined_call_operand.vmem [shape: f32[1,128], index: 3, kind: input, shape index: {}]   ;;  %s6088_s4 = inlined_call_operand.hbm [shape: f32[2,128], index: 4, kind: output, shape index: {}]  }
   0x1   :  { %s4827_s17 = smov 0  }
   0x2 LB: > { %s3358_s18 = sadd.s32 4294967295, %s4791_s17   ;;  %s24_s19 = sadd.s32 1, %s4787_s16  ;;  %s4791_s17 = sphi %s4827_s17, %s15_s17   ;;  %s4787_s16 = sphi %s4825_s16, %s6267_s16   ;;  %s4783_s15 = sphi %s4823_s15, %s6266_s15  }
   0x3   : > { %p25_p0 = scmp.ge.s32.totalorder %s24_s19, 2  ;;  %p3361_p1 = scmp.ge.s32.totalorder %s4791_s17, 1 }
   0x4   : > { %p183_p2 = scmp.lt.s32.totalorder %s4791_s17, 3 }
   0x5   : > { %s6269_s19 = smov (%p25_p0, %s24_s19), 0 }
   0x6   : > { %p184_p3 = pnand %p3361_p1, %p183_p2 }
   0x8   : > { %187 = sbr.rel (%p184_p3) target bundleno = 804 (0x324), region = 36 }
   0xf   : > { %p210_p4 = scmp.lt.s32.totalorder %s4783_s15, 1  ;;  %p3363_p5 = scmp.ne.s32.totalorder %s4783_s15, 0 }
  0x10   : > { %vm224_vm0 = vcmask (!%p3363_p5), 254976   ;;  %v4793_v0 = vmov (!%p3363_p5), 0.0  }
  0x11   : > { %s211_s20 = scalar_select %p210_p4, %s4783_s15, 1 }
  0x12   : > { %223 = sbr.rel (%p3363_p5) target bundleno = 25 (0x19), region = 40  ;;  %225 = vst.msk [vmem:[#allocation2] sm:$0x3] (!%p3363_p5), %vm224_vm0, %v4793_v0 }
  0x13   : > { %s4703_s21 = smul.u32 480, %s211_s20 }
  0x15   : > { %s4849_s24 = scalar_lea.vmem %s6084_s0, %s4703_s21 }
  0x19 PF: > { %v3364_v1 = vld [vmem:[%s6085_s1 + $0x4] sm:$0x7]  ;;  %vm483_vm1 = vcmask 1042432   ;;  %v4858_v2 = vld [vmem:[%s6085_s1 + $0x10] sm:$0x7]  ;;  %v4867_v4 = vld [vmem:[%s4849_s24 + $0x8] sm:$0xff] }
  0x1a   : > { %v4861_v3 = vld [vmem:[%s4849_s24] sm:$0xff]  ;;  %3978 = vmatprep.subr.msk.mxu1 %vm483_vm1, %v3364_v1  ;;  %4178 = vmatprep.subr.msk.mxu0 %vm483_vm1, %v4858_v2  ;;  %vm335_vm2 = vcmask 1046528   ;;  %v337_v7 = vrot.slane %v4867_v4, 1  ;;  %vm418_vm3 = vcmask 23552   ;;  %v4878_v8 = vld [vmem:[%s4849_s24 + $0x18] sm:$0xff]  ;;  %v4900_v18 = vld [vmem:[%s4849_s24 + $0x30] sm:$0xff] }
  0x1b   : > { %v336_v5 = vrot.slane %v4861_v3, 1  ;;  %v286_v6 = vld [vmem:[%s6085_s1] sm:$0x7]  ;;  %3979 = vmatpush3.msk.msra.mxu1 %vm483_vm1, %v3364_v1  ;;  %4179 = vmatpush3.msk.msra.mxu0 %vm483_vm1, %v4858_v2  ;;  %v3533_v10 = vld [vmem:[%s6085_s1 + $0x14] sm:$0x7]  ;;  %v341_v11 = vrot.slane %v4878_v8, 1 }
  0x1c   : > { %v4881_v9 = vld [vmem:[%s4849_s24 + $0x20] sm:$0xff]  ;;  %4028 = vmatprep.subr.msk.mxu1 %vm483_vm1, %v286_v6  ;;  %4228 = vmatprep.subr.msk.mxu0 %vm483_vm1, %v3533_v10  ;;  %v4891_v13 = vld [vmem:[%s4849_s24 + $0x10] sm:$0x3]  ;;  %v4894_v14 = vld [vmem:[%s4849_s24 + $0x28] sm:$0x3]  ;;  %v346_v22 = vrot.slane %v4900_v18, 1 }
  0x1d   : > { %6162 = vst [vmem:[#allocation6_spill] sm:$0xff] %v4881_v9  ;;  %v342_v12 = vrot.slane %v4881_v9, 1  ;;  %v338_v15 = vsel %vm335_vm2, %v336_v5, %v337_v7  ;;  %v339_v16 = vrot.slane %v4891_v13, 1  ;;  %v344_v17 = vrot.slane %v4894_v14, 1  ;;  %v4903_v19 = vld [vmem:[%s4849_s24 + $0x38] sm:$0xff]  ;;  %v4906_v20 = vld [vmem:[%s4849_s24 + $0x48] sm:$0xff] }
  0x1e   : > { %3980 = vmatprep.mubr.msk.f32.mxu1 %vm418_vm3, %v338_v15  ;;  %v347_v23 = vrot.slane %v4903_v19, 1  ;;  %v4913_v24 = vld [vmem:[%s4849_s24 + $0x40] sm:$0x3]  ;;  %v4916_v25 = vld [vmem:[%s4849_s24 + $0x50] sm:$0xff]  ;;  %v351_v29 = vrot.slane %v4906_v20, 1  ;;  %v4930_v32 = vld [vmem:[%s4849_s24 + $0x68] sm:$0xff] }
  0x1f   : > { %v343_v21 = vsel %vm335_vm2, %v341_v11, %v342_v12  ;;  %v340_v26 = vsel %vm335_vm2, %v337_v7, %v339_v16  ;;  %v345_v27 = vsel %vm335_vm2, %v342_v12, %v344_v17  ;;  %v349_v28 = vrot.slane %v4913_v24, 1  ;;  %v4924_v30 = vld [vmem:[%s4849_s24 + $0x58] sm:$0x3]  ;;  %v4927_v31 = vld [vmem:[%s4849_s24 + $0x60] sm:$0xff]  ;;  %v4953_v40 = vld [vmem:[%s4849_s24 + $0x70] sm:$0x3] }
  0x20   : > { %4180 = vmatprep.mubr.msk.f32.mxu0 %vm418_vm3, %v343_v21  ;;  %3981 = vmatmul.mubr.msk.f32.vlgmr.msra.gmra.mrb[0].mxu1 %vm418_vm3, %v340_v26  ;;  %v4935_v33 = vsel %vm335_vm2, %v346_v22, %v347_v23  ;;  %v352_v34 = vrot.slane %v4916_v25, 1  ;;  %v354_v36 = vrot.slane %v4924_v30, 1  ;;  %v356_v38 = vrot.slane %v4927_v31, 1  ;;  %v4956_v41 = vld [vmem:[%s4849_s24 + $0x78] sm:$0xff]  ;;  %v4959_v42 = vld [vmem:[%s4849_s24 + $0x80] sm:$0xff]  ;;  %v4986_v50 = vld [vmem:[%s4849_s24 + $0x90] sm:$0xff] }
  0x21   : > { %4181 = vmatmul.mubr.msk.f32.vlgmr.msra.gmra.mrb[0].mxu0 %vm418_vm3, %v345_v27  ;;  %6163 = vst [vmem:[#allocation7_spill] sm:$0xff] %v4935_v33  ;;  %4029 = vmatpush3.msk.msra.mxu1 %vm483_vm1, %v286_v6  ;;  %v4941_v35 = vsel %vm335_vm2, %v347_v23, %v349_v28  ;;  %v357_v39 = vrot.slane %v4930_v32, 1  ;;  %v359_v44 = vrot.slane %v4953_v40, 1  ;;  %v361_v46 = vrot.slane %v4956_v41, 1  ;;  %v4978_v48 = vld [vmem:[%s4849_s24 + $0x88] sm:$0x3] }
  0x22   : > { %4229 = vmatpush3.msk.msra.mxu0 %vm483_vm1, %v3533_v10  ;;  %6164 = vst [vmem:[#allocation8_spill] sm:$0xff] %v4941_v35  ;;  %3983 = vmatprep.mubr.msk.f32.mxu1 %vm418_vm3, %v343_v21  ;;  %v4948_v37 = vsel %vm335_vm2, %v351_v29, %v352_v34  ;;  %v4969_v43 = vsel %vm335_vm2, %v352_v34, %v354_v36  ;;  %v362_v47 = vrot.slane %v4959_v42, 1  ;;  %v4983_v49 = vld [vmem:[%s6085_s1 + $0x18] sm:$0x7]  ;;  %v364_v53 = vrot.slane %v4978_v48, 1  ;;  %v5014_v58 = vld [vmem:[%s4849_s24 + $0xa8] sm:$0xff] }
  0x23   : > { %4183 = vmatprep.mubr.msk.f32.mxu0 %vm418_vm3, %v4935_v33  ;;  %6165 = vst [vmem:[#allocation9_spill] sm:$0xff] %v4948_v37  ;;  %6166 = vst [vmem:[#allocation10_spill] sm:$0xff] %v4969_v43  ;;  %v4973_v45 = vsel %vm335_vm2, %v356_v38, %v357_v39  ;;  %v4989_v51 = vld [vmem:[%s4849_s24 + $0x98] sm:$0xff]  ;;  %4278 = vmatprep.subr.msk.mxu0 %vm483_vm1, %v4983_v49  ;;  %v5002_v52 = vsel %vm335_vm2, %v357_v39, %v359_v44  ;;  %v366_v55 = vrot.slane %v4986_v50, 1  ;;  %v5011_v57 = vld [vmem:[%s4849_s24 + $0xa0] sm:$0x3] }
  0x24   : > { %3984 = vmatmul.mubr.msk.f32.gmra.mrb[2].mxu1 %vm418_vm3, %v345_v27  ;;  %6167 = vst [vmem:[#allocation11_spill] sm:$0xff] %v4973_v45  ;;  %6168 = vst [vmem:[#allocation12_spill] sm:$0xff] %v5002_v52  ;;  %v5006_v54 = vsel %vm335_vm2, %v361_v46, %v362_v47  ;;  %v367_v56 = vrot.slane %v4989_v51, 1  ;;  %v5017_v59 = vld [vmem:[%s4849_s24 + $0xb0] sm:$0xff]  ;;  %v5028_v60 = vsel %vm335_vm2, %v362_v47, %v364_v53  ;;  %v369_v61 = vrot.slane %v5011_v57, 1  ;;  %v5045_v6 = vld [vmem:[%s4849_s24 + $0xc0] sm:$0xff] }
  0x25   : > { %4184 = vmatmul.mubr.msk.f32.gmra.mrb[2].mxu0 %vm418_vm3, %v4941_v35  ;;  %3986 = vmatprep.mubr.msk.f32.mxu1 %vm418_vm3, %v4935_v33  ;;  %6169 = vst [vmem:[#allocation13_spill] sm:$0xff] %v5006_v54  ;;  %6170 = vst [vmem:[#allocation14_spill] sm:$0xff] %v5028_v60  ;;  %v371_v63 = vrot.slane %v5014_v58, 1  ;;  %v372_v0 = vrot.slane %v5017_v59, 1  ;;  %v5037_v1 = vld [vmem:[%s4849_s24 + $0xb8] sm:$0x3] }
  0x26   : > { %4186 = vmatprep.mubr.msk.f32.mxu0 %vm418_vm3, %v4948_v37  ;;  %v5032_v62 = vsel %vm335_vm2, %v366_v55, %v367_v56  ;;  %v5042_v5 = vld [vmem:[%s6085_s1 + $0x8] sm:$0x7]  ;;  %v5061_v10 = vsel %vm335_vm2, %v367_v56, %v369_v61  ;;  %v374_v11 = vrot.slane %v5037_v1, 1  ;;  %v1687_v15 = vrot.slane %v5045_v6, 1  ;;  %v5070_v17 = vld [vmem:[%s4849_s24 + $0xd0] sm:$0x3] }
  0x27   : > { %6171 = vst [vmem:[#allocation15_spill] sm:$0xff] %v5032_v62  ;;  %v5048_v7 = vld [vmem:[%s4849_s24 + $0xc8] sm:$0xff]  ;;  %4078 = vmatprep.subr.msk.mxu1 %vm483_vm1, %v5042_v5  ;;  %6172 = vst [vmem:[#allocation16_spill] sm:$0xff] %v5061_v10  ;;  %v5065_v12 = vsel %vm335_vm2, %v371_v63, %v372_v0  ;;  %v5073_v21 = vld [vmem:[%s4849_s24 + $0xf0] sm:$0xff]  ;;  %v1690_v26 = vrot.slane %v5070_v17, 1  ;;  %v1010_v36 = vrot.slane %v4878_v8, 2 }
  0x28   : > { %3987 = vmatmul.mubr.msk.f32.gmra.mrb[4].mxu1 %vm418_vm3, %v4941_v35  ;;  %6173 = vst [vmem:[#allocation17_spill] sm:$0xff] %v5065_v12  ;;  %v1688_v16 = vrot.slane %v5048_v7, 1  ;;  %v5076_v22 = vld [vmem:[%s4849_s24 + $0xf8] sm:$0xff]  ;;  %v5087_v23 = vsel %vm335_vm2, %v372_v0, %v374_v11  ;;  %v376_v27 = vrot.slane %v5073_v21, 1  ;;  %v5092_v28 = vld [vmem:[%s4849_s24 + $0x100] sm:$0x3] }
  0x29   : > { %4187 = vmatmul.mubr.msk.f32.gmra.mrb[4].mxu0 %vm418_vm3, %v4969_v43  ;;  %3989 = vmatprep.mubr.msk.f32.mxu1 %vm418_vm3, %v4948_v37  ;;  %6174 = vst [vmem:[#allocation18_spill] sm:$0xff] %v5087_v23  ;;  %6175 = vst [vmem:[#allocation19_spill] sm:$0xff] %v5092_v28  ;;  %v377_v34 = vrot.slane %v5076_v22, 1  ;;  %v1011_v38 = vrot.slane %v4881_v9, 2  ;;  %vm1004_vm4 = vcmask 1045504   ;;  %v5101_v39 = vld [vmem:[%s4849_s24 + $0x108] sm:$0xff] }
  0x2a   : > { %4189 = vmatprep.mubr.msk.f32.mxu0 %vm418_vm3, %v4973_v45  ;;  %v5095_v29 = vsel %vm335_vm2, %v1687_v15, %v1688_v16  ;;  %v5104_v44 = vld [vmem:[%s4849_s24 + $0x110] sm:$0xff]  ;;  %v1013_v46 = vrot.slane %v4894_v14, 2  ;;  %v379_v47 = vrot.slane %v5092_v28, 1  ;;  %v5117_v53 = vsel %vm335_vm2, %v1688_v16, %v1690_v26  ;;  %v5120_v55 = vld [vmem:[%s4849_s24 + $0x118] sm:$0x3]  ;;  %v5129_v0 = vld [vmem:[%s4849_s24 + $0x120] sm:$0xff] }
  0x2b   : > { %6176 = vst [vmem:[#allocation20_spill] sm:$0xff] %v5095_v29  ;;  %6177 = vst [vmem:[#allocation21_spill] sm:$0xff] %v5117_v53  ;;  %v378_v14 = vsel %vm335_vm2, %v376_v27, %v377_v34  ;;  %v5124_v56 = vsel %vm1004_vm4, %v1010_v36, %v1011_v38  ;;  %v381_v61 = vrot.slane %v5101_v39, 1  ;;  %v382_v63 = vrot.slane %v5104_v44, 1  ;;  %v5132_v11 = vld [vmem:[%s4849_s24 + $0x128] sm:$0xff]  ;;  %v5244_v37 = vld [vmem:[%s4849_s24 + $0x170] sm:$0xff] }
  0x2c   : > { %3990 = vmatmul.mubr.msk.f32.gmra.mrb[6].mxu1 %vm418_vm3, %v4969_v43  ;;  %v1015_v15 = vrot.slane %v4900_v18, 2  ;;  %v1016_v16 = vrot.slane %v4903_v19, 2  ;;  %v380_v26 = vsel %vm335_vm2, %v377_v34, %v379_v47  ;;  %v5142_v27 = vsel %vm1004_vm4, %v1011_v38, %v1013_v46  ;;  %v5154_v47 = vld [vmem:[%s4849_s24 + $0x130] sm:$0x3]  ;;  %v5163_v46 = vld [vmem:[%s4849_s24 + $0x138] sm:$0xff]  ;;  %6188 = vst [vmem:[#allocation32_spill] sm:$0xff] %v5244_v37 }
  0x2d   : > { %4190 = vmatmul.mubr.msk.f32.gmra.mrb[6].mxu0 %vm418_vm3, %v5002_v52  ;;  %3992 = vmatprep.mubr.msk.f32.mxu1 %vm418_vm3, %v4973_v45  ;;  %v384_v36 = vrot.slane %v5120_v55, 1  ;;  %v1021_v34 = vrot.slane %v4916_v25, 2  ;;  %v5157_v38 = vsel %vm335_vm2, %v381_v61, %v382_v63  ;;  %v1028_v45 = vrot.slane %v4953_v40, 2  ;;  %p3669_p6 = scmp.ne.s32.totalorder %s4783_s15, 1 }
  0x2e   : > { %4192 = vmatprep.mubr.msk.f32.mxu0 %vm418_vm3, %v5006_v54  ;;  %6178 = vst [vmem:[#allocation22_spill] sm:$0xff] %v5157_v38  ;;  %vm3116_vm5 = vcmask 261120   ;;  %vm3193_vm6 = vcmask 1041409   ;;  %vm3197_vm7 = vcmask 254976   ;;  %vm4795_vm8 = vmmov (!%p3669_p6), 0  }
  0x2f   : > { %v5177_v61 = vsel %vm335_vm2, %v382_v63, %v384_v36  ;;  %v5195_v63 = vld [vmem:[%s4849_s24 + $0x148] sm:$0x3]  ;;  %v1025_v36 = vrot.slane %v4927_v31, 2 }
  0x30   : > { %3993 = vmatmul.mubr.msk.f32.gmra.mrb[8].mxu1 %vm418_vm3, %v5002_v52  ;;  %6180 = vst [vmem:[#allocation24_spill] sm:$0xff] %v5177_v61  ;;  %v394_v52 = vrot.slane %v5195_v63, 1 }
  0x31   : > { %4193 = vmatmul.mubr.msk.f32.gmra.mrb[8].mxu0 %vm418_vm3, %v5028_v60  ;;  %3995 = vmatprep.mubr.msk.f32.mxu1 %vm418_vm3, %v5006_v54 }
  0x32   : > { %4195 = vmatprep.mubr.msk.f32.mxu0 %vm418_vm3, %v5032_v62 }
  0x34   : > { %3996 = vmatmul.mubr.msk.f32.gmra.mrb[10].mxu1 %vm418_vm3, %v5028_v60 }
  0x35   : > { %4196 = vmatmul.mubr.msk.f32.gmra.mrb[10].mxu0 %vm418_vm3, %v5061_v10  ;;  %3998 = vmatprep.mubr.msk.f32.mxu1 %vm418_vm3, %v5032_v62  ;;  %v1023_v62 = vrot.slane %v4924_v30, 2  ;;  %v391_v30 = vrot.slane %v5163_v46, 1 }
  0x36   : > { %4198 = vmatprep.mubr.msk.f32.mxu0 %vm418_vm3, %v5065_v12 }
  0x38   : > { %3999 = vmatmul.mubr.msk.f32.gmra.mrb[12].mxu1 %vm418_vm3, %v5061_v10  ;;  %v5171_v10 = vld [vmem:[%s6085_s1 + $0x1c] sm:$0x7] }
  0x39   : > { %4199 = vmatmul.mubr.msk.f32.gmra.mrb[12].mxu0 %vm418_vm3, %v5087_v23  ;;  %4001 = vmatprep.mubr.msk.f32.mxu1 %vm418_vm3, %v5065_v12  ;;  %v387_v12 = vrot.slane %v5132_v11, 1 }
  0x3a   : > { %4201 = vmatprep.mubr.msk.f32.mxu0 %vm418_vm3, %v5095_v29  ;;  %v1018_v29 = vrot.slane %v4913_v24, 2  ;;  %v5160_v24 = vsel %vm1004_vm4, %v1015_v15, %v1016_v16  ;;  %v389_v15 = vrot.slane %v5154_v47, 1 }
  0x3b   : > { %6179 = vst [vmem:[#allocation23_spill] sm:$0xff] %v5160_v24 }
  0x3c   : > { %4002 = vmatmul.mubr.msk.f32.gmra.mrb[14].mxu1 %vm418_vm3, %v5087_v23  ;;  %v386_v23 = vrot.slane %v5129_v0, 1 }
  0x3d   : > { %4202 = vmatmul.mubr.msk.f32.gmra.mrb[14].mxu0 %vm418_vm3, %v5117_v53  ;;  %4004 = vmatprep.mubr.msk.f32.mxu1 %vm418_vm3, %v378_v14  ;;  %v1020_v53 = vrot.slane %v4906_v20, 2  ;;  %v5166_v14 = vld [vmem:[%s4849_s24 + $0x140] sm:$0xff] }
  0x3e   : > { %4230 = vmatprep.mubr.msk.f32.mxu0 %vm418_vm3, %v5124_v56  ;;  %v5189_v60 = vsel %vm335_vm2, %v386_v23, %v387_v12  ;;  %v5207_v23 = vld [vmem:[%s4849_s24 + $0x158] sm:$0xff] }
  0x3f   : > { %6182 = vst [vmem:[#allocation26_spill] sm:$0xff] %v5189_v60  ;;  %v5192_v54 = vsel %vm1004_vm4, %v1020_v53, %v1021_v34  ;;  %v5216_v53 = vsel %vm335_vm2, %v387_v12, %v389_v15  ;;  %v397_v43 = vrot.slane %v5207_v23, 1  ;;  %v1030_v12 = vrot.slane %v4956_v41, 2 }
  0x40   : > { %4005 = vmatmul.mubr.msk.f32.gmra.mrb[16].mxu1 %vm418_vm3, %v380_v26  ;;  %v5186_v26 = vsel %vm1004_vm4, %v1016_v16, %v1018_v29  ;;  %6183 = vst [vmem:[#allocation27_spill] sm:$0xff] %v5192_v54  ;;  %v1026_v29 = vrot.slane %v4930_v32, 2  ;;  %v5204_v16 = vld [vmem:[%s4849_s24 + $0x150] sm:$0xff]  ;;  %6184 = vst [vmem:[#allocation28_spill] sm:$0xff] %v5216_v53  ;;  %v1031_v15 = vrot.slane %v4959_v42, 2 }
  0x41   : > { %4231 = vmatmul.mubr.msk.f32.vlgmr.msra.gmra.mrb[0].mxu0 %vm418_vm3, %v5142_v27  ;;  %4007 = vmatprep.mubr.msk.f32.mxu1 %vm418_vm3, %v5157_v38  ;;  %6181 = vst [vmem:[#allocation25_spill] sm:$0xff] %v5186_v26  ;;  %v5219_v38 = vsel %vm1004_vm4, %v1021_v34, %v1023_v62  ;;  %v5232_v62 = vld [vmem:[%s4849_s24 + $0x160] sm:$0x3] }
  0x42   : > { %4279 = vmatpush3.msk.msra.mxu0 %vm483_vm1, %v4983_v49  ;;  %4233 = vmatprep.mubr.msk.f32.mxu0 %vm418_vm3, %v5160_v24  ;;  %v392_v49 = vrot.slane %v5166_v14, 1  ;;  %6185 = vst [vmem:[#allocation29_spill] sm:$0xff] %v5219_v38  ;;  %v5238_v40 = vsel %vm1004_vm4, %v1025_v36, %v1026_v29  ;;  %v1033_v36 = vrot.slane %v4978_v48, 2  ;;  %v5260_v33 = vsel %vm1004_vm4, %v1026_v29, %v1028_v45  ;;  %v5279_v45 = vld [vmem:[%s4849_s24 + $0x188] sm:$0xff] }
  0x43   : > { %4328 = vmatprep.subr.msk.mxu0 %vm483_vm1, %v5171_v10  ;;  %6187 = vst [vmem:[#allocation31_spill] sm:$0xff] %v5238_v40  ;;  %6190 = vst [vmem:[#allocation34_spill] sm:$0xff] %v5260_v33  ;;  %v5266_v28 = vsel %vm1004_vm4, %v1030_v12, %v1031_v15  ;;  %v402_v48 = vrot.slane %v5244_v37, 1  ;;  %v5343_v24 = vld [vmem:[%s4849_s24 + $0x1a8] sm:$0x3] }
  0x44   : > { %4008 = vmatmul.mubr.msk.f32.gmra.mrb[18].mxu1 %vm418_vm3, %v5177_v61  ;;  %v396_v61 = vrot.slane %v5204_v16, 1  ;;  %v5235_v34 = vsel %vm335_vm2, %v391_v30, %v392_v49  ;;  %v5251_v35 = vsel %vm335_vm2, %v392_v49, %v394_v52  ;;  %v399_v30 = vrot.slane %v5232_v62, 1  ;;  %6192 = vst [vmem:[#allocation36_spill] sm:$0xff] %v5266_v28  ;;  %v5269_v52 = vld [vmem:[%s4849_s24 + $0x178] sm:$0x3]  ;;  %6194 = vst [vmem:[#allocation38_spill] sm:$0xff] %v5279_v45 }
  0x45   : > { %4234 = vmatmul.mubr.msk.f32.gmra.mrb[2].mxu0 %vm418_vm3, %v5186_v26  ;;  %4010 = vmatprep.mubr.msk.f32.mxu1 %vm418_vm3, %v5189_v60  ;;  %6186 = vst [vmem:[#allocation30_spill] sm:$0xff] %v5235_v34  ;;  %v5241_v60 = vld [vmem:[%s4849_s24 + $0x168] sm:$0xff]  ;;  %6189 = vst [vmem:[#allocation33_spill] sm:$0xff] %v5251_v35  ;;  %v5289_v29 = vsel %vm1004_vm4, %v1031_v15, %v1033_v36  ;;  %v404_v12 = vrot.slane %v5269_v52, 1 }
  0x46   : > { %4236 = vmatprep.mubr.msk.f32.mxu0 %vm418_vm3, %v5192_v54  ;;  %v401_v49 = vrot.slane %v5241_v60, 1  ;;  %6196 = vst [vmem:[#allocation40_spill] sm:$0xff] %v5289_v29  ;;  %v1038_v54 = vrot.slane %v5011_v57, 2  ;;  %v5308_v57 = vld [vmem:[%s4849_s24 + $0x190] sm:$0x3] }
  0x47   : > { %v5321_v26 = vsel %vm335_vm2, %v402_v48, %v404_v12 }
  0x48   : > { %4011 = vmatmul.mubr.msk.f32.gmra.mrb[20].mxu1 %vm418_vm3, %v5216_v53  ;;  %v5263_v53 = vsel %vm335_vm2, %v396_v61, %v397_v43  ;;  %v5286_v61 = vsel %vm335_vm2, %v397_v43, %v399_v30  ;;  %v1040_v43 = vrot.slane %v5014_v58, 2  ;;  %v1041_v30 = vrot.slane %v5017_v59, 2  ;;  %6201 = vst [vmem:[#allocation45_spill] sm:$0xff] %v5321_v26 }
  0x49   : > { %4237 = vmatmul.mubr.msk.f32.gmra.mrb[4].mxu0 %vm418_vm3, %v5219_v38  ;;  %4013 = vmatprep.mubr.msk.f32.mxu1 %vm418_vm3, %v5235_v34  ;;  %6191 = vst [vmem:[#allocation35_spill] sm:$0xff] %v5263_v53  ;;  %v1035_v34 = vrot.slane %v4986_v50, 2  ;;  %v1036_v38 = vrot.slane %v4989_v51, 2  ;;  %6195 = vst [vmem:[#allocation39_spill] sm:$0xff] %v5286_v61  ;;  %v5302_v15 = vsel %vm335_vm2, %v401_v49, %v402_v48  ;;  %v1043_v48 = vrot.slane %v5037_v1, 2 }
  0x4a   : > { %4239 = vmatprep.mubr.msk.f32.mxu0 %vm418_vm3, %v5238_v40  ;;  %v5276_v40 = vld [vmem:[%s4849_s24 + $0x180] sm:$0xff]  ;;  %6197 = vst [vmem:[#allocation41_spill] sm:$0xff] %v5302_v15 }
  0x4b   : > { %6193 = vst [vmem:[#allocation37_spill] sm:$0xff] %v5276_v40  ;;  %v5305_v36 = vsel %vm1004_vm4, %v1035_v34, %v1036_v38  ;;  %v5324_v49 = vsel %vm1004_vm4, %v1036_v38, %v1038_v54  ;;  %v1967_v38 = vrot.slane %v5045_v6, 2  ;;  %v5357_v1 = vsel %vm1004_vm4, %v1041_v30, %v1043_v48 }
  0x4c   : > { %4014 = vmatmul.mubr.msk.f32.gmra.mrb[22].mxu1 %vm418_vm3, %v5251_v35  ;;  %v406_v35 = vrot.slane %v5276_v40, 1  ;;  %6198 = vst [vmem:[#allocation42_spill] sm:$0xff] %v5305_v36  ;;  %6202 = vst [vmem:[#allocation46_spill] sm:$0xff] %v5324_v49  ;;  %v1055_v48 = vrot.slane %v5129_v0, 2 }
  0x4d   : > { %4240 = vmatmul.mubr.msk.f32.gmra.mrb[6].mxu0 %vm418_vm3, %v5260_v33  ;;  %4016 = vmatprep.mubr.msk.f32.mxu1 %vm418_vm3, %v5263_v53  ;;  %v407_v33 = vrot.slane %v5279_v45, 1  ;;  %v5311_v53 = vld [vmem:[%s4849_s24 + $0x198] sm:$0xff] }
  0x4e   : > { %4242 = vmatprep.mubr.msk.f32.mxu0 %vm418_vm3, %v5266_v28  ;;  %6199 = vst [vmem:[#allocation43_spill] sm:$0xff] %v5311_v53  ;;  %v5314_v28 = vld [vmem:[%s4849_s24 + $0x1a0] sm:$0xff]  ;;  %v411_v12 = vrot.slane %v5311_v53, 1 }
  0x4f   : > { %6200 = vst [vmem:[#allocation44_spill] sm:$0xff] %v5314_v28  ;;  %v5331_v34 = vsel %vm335_vm2, %v406_v35, %v407_v33  ;;  %v412_v54 = vrot.slane %v5314_v28, 1 }
  0x50   : > { %4017 = vmatmul.mubr.msk.f32.gmra.mrb[24].mxu1 %vm418_vm3, %v5286_v61  ;;  %6203 = vst [vmem:[#allocation47_spill] sm:$0xff] %v5331_v34  ;;  %v5334_v61 = vsel %vm1004_vm4, %v1040_v43, %v1041_v30  ;;  %v414_v43 = vrot.slane %v5343_v24, 1 }
  0x51   : > { %4243 = vmatmul.mubr.msk.f32.gmra.mrb[8].mxu0 %vm418_vm3, %v5289_v29  ;;  %4019 = vmatprep.mubr.msk.f32.mxu1 %vm418_vm3, %v5302_v15  ;;  %6204 = vst [vmem:[#allocation48_spill] sm:$0xff] %v5334_v61  ;;  %v409_v29 = vrot.slane %v5308_v57, 1  ;;  %v1968_v15 = vrot.slane %v5048_v7, 2 }
  0x52   : > { %4245 = vmatprep.mubr.msk.f32.mxu0 %vm418_vm3, %v5305_v36  ;;  %v1970_v36 = vrot.slane %v5070_v17, 2 }
  0x53   : > { %v5354_v35 = vsel %vm335_vm2, %v407_v33, %v409_v29  ;;  %v5378_v33 = vsel %vm335_vm2, %v412_v54, %v414_v43  ;;  %v1053_v29 = vrot.slane %v5120_v55, 2 }
  0x54   : > { %4020 = vmatmul.mubr.msk.f32.gmra.mrb[26].mxu1 %vm418_vm3, %v5321_v26  ;;  %6205 = vst [vmem:[#allocation49_spill] sm:$0xff] %v5354_v35  ;;  %v5362_v26 = vsel %vm335_vm2, %v411_v12, %v412_v54  ;;  %6208 = vst [vmem:[#allocation52_spill] sm:$0xff] %v5378_v33  ;;  %v5381_v17 = vsel %vm1004_vm4, %v1968_v15, %v1970_v36  ;;  %v1056_v12 = vrot.slane %v5132_v11, 2  ;;  %v1060_v36 = vrot.slane %v5163_v46, 2 }
  0x55   : > { %4246 = vmatmul.mubr.msk.f32.gmra.mrb[10].mxu0 %vm418_vm3, %v5324_v49  ;;  %4022 = vmatprep.mubr.msk.f32.mxu1 %vm418_vm3, %v5331_v34  ;;  %6206 = vst [vmem:[#allocation50_spill] sm:$0xff] %v5362_v26  ;;  %v5365_v49 = vsel %vm1004_vm4, %v1967_v38, %v1968_v15  ;;  %v1050_v34 = vrot.slane %v5101_v39, 2  ;;  %6209 = vst [vmem:[#allocation53_spill] sm:$0xff] %v5381_v17  ;;  %v1058_v15 = vrot.slane %v5154_v47, 2  ;;  %v5409_v38 = vld [vmem:[%s6085_s1 + $0xc] sm:$0x7] }
  0x56   : > { %4248 = vmatprep.mubr.msk.f32.mxu0 %vm418_vm3, %v5334_v61  ;;  %6207 = vst [vmem:[#allocation51_spill] sm:$0xff] %v5365_v49  ;;  %v1051_v61 = vrot.slane %v5104_v44, 2  ;;  %v5404_v54 = vsel %vm1004_vm4, %v1055_v48, %v1056_v12  ;;  %v1066_v48 = vrot.slane %v5207_v23, 2 }
  0x57   : > { %v5420_v47 = vsel %vm1004_vm4, %v1056_v12, %v1058_v15  ;;  %v1070_v15 = vrot.slane %v5241_v60, 2 }
  0x58   : > { %4023 = vmatmul.mubr.msk.f32.gmra.mrb[28].mxu1 %vm418_vm3, %v5354_v35  ;;  %v5385_v30 = vsel %vm1004_vm4, %v1050_v34, %v1051_v61  ;;  %v5398_v55 = vsel %vm1004_vm4, %v1051_v61, %v1053_v29  ;;  %v1061_v34 = vrot.slane %v5166_v14, 2  ;;  %v1063_v61 = vrot.slane %v5195_v63, 2 }
  0x59   : > { %4249 = vmatmul.mubr.msk.f32.gmra.mrb[12].mxu0 %vm418_vm3, %v5357_v1  ;;  %4025 = vmatprep.mubr.msk.f32.mxu1 %vm418_vm3, %v5362_v26  ;;  %v1065_v29 = vrot.slane %v5204_v16, 2  ;;  %v1068_v63 = vrot.slane %v5232_v62, 2  ;;  %v5487_v26 = vld [vmem:[%s4849_s24 + $0x1b8] sm:$0xff] }
  0x5a   : > { %4251 = vmatprep.mubr.msk.f32.mxu0 %vm418_vm3, %v5365_v49  ;;  %v5426_v43 = vsel %vm1004_vm4, %v1060_v36, %v1061_v34  ;;  %v1071_v36 = vrot.slane %v5244_v37, 2  ;;  %v1081_v49 = vrot.slane %v5314_v28, 2  ;;  %v1973_v35 = vrot.slane %v5487_v26, 2 }
  0x5b   : > { %v5445_v12 = vsel %vm1004_vm4, %v1065_v29, %v1066_v48  ;;  %v5458_v62 = vsel %vm1004_vm4, %v1066_v48, %v1068_v63  ;;  %v1075_v29 = vrot.slane %v5276_v40, 2  ;;  %v1078_v48 = vrot.slane %v5308_v57, 2 }
  0x5c   : > { %4026 = vmatmul.mubr.msk.f32.gmra.mrb[30].mxu1 %vm418_vm3, %v5378_v33  ;;  %v5484_v33 = vld [vmem:[%s4849_s24 + $0x1b0] sm:$0xff] }
  0x5d   : > { %4252 = vmatmul.mubr.msk.f32.gmra.mrb[14].mxu0 %vm418_vm3, %v5381_v17  ;;  %4030 = vmatprep.mubr.msk.f32.mxu1 %vm418_vm3, %v4861_v3  ;;  %v1076_v17 = vrot.slane %v5279_v45, 2 }
  0x5e   : > { %4254 = vmatprep.mubr.msk.f32.mxu0 %vm418_vm3, %v5385_v30 }
  0x5f   : > { %v5479_v63 = vsel %vm1004_vm4, %v1075_v29, %v1076_v17  ;;  %v5498_v57 = vsel %vm1004_vm4, %v1076_v17, %v1078_v48  ;;  %v1972_v29 = vrot.slane %v5484_v33, 2 }
  0x60   : > { %4031 = vmatmul.mubr.msk.f32.vlgmr.msra.gmra.mrb[0].mxu1 %vm418_vm3, %v4867_v4 }
  0x61   : > { %4255 = vmatmul.mubr.msk.f32.gmra.mrb[16].mxu0 %vm418_vm3, %v5398_v55  ;;  %4079 = vmatpush3.msk.msra.mxu1 %vm483_vm1, %v5042_v5  ;;  %v5441_v5 = vsel %vm1004_vm4, %v1061_v34, %v1063_v61  ;;  %v1073_v34 = vrot.slane %v5269_v52, 2  ;;  %v5462_v61 = vsel %vm1004_vm4, %v1070_v15, %v1071_v36  ;;  %v1080_v15 = vrot.slane %v5311_v53, 2 }
  0x62   : > { %4033 = vmatprep.mubr.msk.f32.mxu1 %vm418_vm3, %v4878_v8  ;;  %4257 = vmatprep.mubr.msk.f32.mxu0 %vm418_vm3, %v5404_v54  ;;  %v5522_v48 = vsel %vm1004_vm4, %v1972_v29, %v1973_v35  ;;  %v1008_v29 = vrot.slane %v4891_v13, 2  ;;  %v6212_v13 = vld [vmem:[#allocation23_spill] sm:$0xff] }
  0x63   : > { %4128 = vmatprep.subr.msk.mxu1 %vm483_vm1, %v5409_v38  ;;  %v5475_v52 = vsel %vm1004_vm4, %v1071_v36, %v1073_v34  ;;  %v1083_v36 = vrot.slane %v5343_v24, 2  ;;  %v5502_v34 = vsel %vm1004_vm4, %v1080_v15, %v1081_v49  ;;  %6210 = vst [vmem:[#allocation54_spill] sm:$0xff] %v5522_v48  ;;  %v5546_v15 = vld [vmem:[%s6085_s1 + $0x20] sm:$0x7] }
  0x64   : > { %4034 = vmatmul.mubr.msk.f32.gmra.mrb[2].mxu1 %vm418_vm3, %v4881_v9  ;;  %v5507_v9 = vld [vmem:[%s4849_s24 + $0x1c0] sm:$0x3] }
  0x65   : > { %4258 = vmatmul.mubr.msk.f32.gmra.mrb[18].mxu0 %vm418_vm3, %v5420_v47  ;;  %4036 = vmatprep.mubr.msk.f32.mxu1 %vm418_vm3, %v4900_v18  ;;  %v5518_v24 = vsel %vm1004_vm4, %v1081_v49, %v1083_v36  ;;  %v1975_v17 = vrot.slane %v5507_v9, 2  ;;  %v1006_v36 = vrot.slane %v4867_v4, 2 }
  0x66   : > { %4260 = vmatprep.mubr.msk.f32.mxu0 %vm418_vm3, %v5426_v43 }
  0x67   : > { %v5533_v49 = vsel %vm1004_vm4, %v1973_v35, %v1975_v17  ;;  %v1005_v35 = vrot.slane %v4861_v3, 2  ;;  %v5615_v17 = vld [vmem:[%s4849_s24 + $0xe0] sm:$0xff]  ;;  %v1009_v4 = vsel %vm1004_vm4, %v1006_v36, %v1008_v29  ;;  %v6218_v29 = vld [vmem:[#allocation36_spill] sm:$0xff] }
  0x68   : > { %4037 = vmatmul.mubr.msk.f32.gmra.mrb[4].mxu1 %vm418_vm3, %v4903_v19  ;;  %6211 = vst [vmem:[#allocation55_spill] sm:$0xff] %v5533_v49 }
  0x69   : > { %4261 = vmatmul.mubr.msk.f32.gmra.mrb[20].mxu0 %vm418_vm3, %v5441_v5  ;;  %4039 = vmatprep.mubr.msk.f32.mxu1 %vm418_vm3, %v4906_v20  ;;  %v1007_v3 = vsel %vm1004_vm4, %v1005_v35, %v1006_v36  ;;  %v6216_v35 = vld [vmem:[#allocation31_spill] sm:$0xff]  ;;  %v6217_v36 = vld [vmem:[#allocation34_spill] sm:$0xff] }
  0x6a   : > { %4263 = vmatprep.mubr.msk.f32.mxu0 %vm418_vm3, %v5445_v12 }
  0x6c   : > { %4040 = vmatmul.mubr.msk.f32.gmra.mrb[6].mxu1 %vm418_vm3, %v4916_v25 }
  0x6d   : > { %4264 = vmatmul.mubr.msk.f32.gmra.mrb[22].mxu0 %vm418_vm3, %v5458_v62  ;;  %4042 = vmatprep.mubr.msk.f32.mxu1 %vm418_vm3, %v4927_v31 }
  0x6e   : > { %4266 = vmatprep.mubr.msk.f32.mxu0 %vm418_vm3, %v5462_v61 }
  0x70   : > { %4043 = vmatmul.mubr.msk.f32.gmra.mrb[8].mxu1 %vm418_vm3, %v4930_v32 }
  0x71   : > { %4267 = vmatmul.mubr.msk.f32.gmra.mrb[24].mxu0 %vm418_vm3, %v5475_v52  ;;  %4045 = vmatprep.mubr.msk.f32.mxu1 %vm418_vm3, %v4956_v41 }
  0x72   : > { %4269 = vmatprep.mubr.msk.f32.mxu0 %vm418_vm3, %v5479_v63 }
  0x74   : > { %4046 = vmatmul.mubr.msk.f32.gmra.mrb[10].mxu1 %vm418_vm3, %v4959_v42 }
  0x75   : > { %4270 = vmatmul.mubr.msk.f32.gmra.mrb[26].mxu0 %vm418_vm3, %v5498_v57  ;;  %4048 = vmatprep.mubr.msk.f32.mxu1 %vm418_vm3, %v4986_v50 }
  0x76   : > { %4272 = vmatprep.mubr.msk.f32.mxu0 %vm418_vm3, %v5502_v34 }
  0x78   : > { %4049 = vmatmul.mubr.msk.f32.gmra.mrb[12].mxu1 %vm418_vm3, %v4989_v51 }
  0x79   : > { %4273 = vmatmul.mubr.msk.f32.gmra.mrb[28].mxu0 %vm418_vm3, %v5518_v24  ;;  %4051 = vmatprep.mubr.msk.f32.mxu1 %vm418_vm3, %v5014_v58 }
  0x7a   : > { %4275 = vmatprep.mubr.msk.f32.mxu0 %vm418_vm3, %v5522_v48  ;;  %v1045_v48 = vrot.slane %v5073_v21, 2 }
  0x7c   : > { %4052 = vmatmul.mubr.msk.f32.gmra.mrb[14].mxu1 %vm418_vm3, %v5017_v59 }
  0x7d   : > { %4276 = vmatmul.mubr.msk.f32.gmra.mrb[30].mxu0 %vm418_vm3, %v5533_v49  ;;  %4054 = vmatprep.mubr.msk.f32.mxu1 %vm418_vm3, %v5073_v21  ;;  %v5678_v49 = vld [vmem:[%s4849_s24 + $0x1c8] sm:$0xff] }
  0x7e   : > { %4280 = vmatprep.mubr.msk.f32.mxu0 %vm418_vm3, %v4900_v18 }
  0x80   : > { %4055 = vmatmul.mubr.msk.f32.gmra.mrb[16].mxu1 %vm418_vm3, %v5076_v22 }
  0x81   : > { %4281 = vmatmul.mubr.msk.f32.vlgmr.msra.gmra.mrb[0].mxu0 %vm418_vm3, %v4903_v19  ;;  %4057 = vmatprep.mubr.msk.f32.mxu1 %vm418_vm3, %v5101_v39 }
  0x82   : > { %4329 = vmatpush3.msk.msra.mxu0 %vm483_vm1, %v5171_v10  ;;  %4283 = vmatprep.mubr.msk.f32.mxu0 %vm418_vm3, %v4906_v20  ;;  %v5601_v10 = vld [vmem:[%s4849_s24 + $0xd8] sm:$0xff] }
  0x83   : > { %4378 = vmatprep.subr.msk.mxu0 %vm483_vm1, %v5546_v15 }
  0x84   : > { %4058 = vmatmul.mubr.msk.f32.gmra.mrb[18].mxu1 %vm418_vm3, %v5104_v44 }
  0x85   : > { %4284 = vmatmul.mubr.msk.f32.gmra.mrb[2].mxu0 %vm418_vm3, %v4916_v25  ;;  %4060 = vmatprep.mubr.msk.f32.mxu1 %vm418_vm3, %v5129_v0 }
  0x86   : > { %4286 = vmatprep.mubr.msk.f32.mxu0 %vm418_vm3, %v4927_v31 }
  0x88   : > { %4061 = vmatmul.mubr.msk.f32.gmra.mrb[20].mxu1 %vm418_vm3, %v5132_v11 }
  0x89   : > { %4287 = vmatmul.mubr.msk.f32.gmra.mrb[4].mxu0 %vm418_vm3, %v4930_v32  ;;  %4063 = vmatprep.mubr.msk.f32.mxu1 %vm418_vm3, %v5163_v46 }
  0x8a   : > { %4289 = vmatprep.mubr.msk.f32.mxu0 %vm418_vm3, %v4956_v41 }
  0x8c   : > { %4064 = vmatmul.mubr.msk.f32.gmra.mrb[22].mxu1 %vm418_vm3, %v5166_v14 }
  0x8d   : > { %4290 = vmatmul.mubr.msk.f32.gmra.mrb[6].mxu0 %vm418_vm3, %v4959_v42  ;;  %4066 = vmatprep.mubr.msk.f32.mxu1 %vm418_vm3, %v5204_v16 }
  0x8e   : > { %4292 = vmatprep.mubr.msk.f32.mxu0 %vm418_vm3, %v4986_v50 }
  0x90   : > { %4067 = vmatmul.mubr.msk.f32.gmra.mrb[24].mxu1 %vm418_vm3, %v5207_v23 }
  0x91   : > { %4293 = vmatmul.mubr.msk.f32.gmra.mrb[8].mxu0 %vm418_vm3, %v4989_v51  ;;  %4069 = vmatprep.mubr.msk.f32.mxu1 %vm418_vm3, %v5241_v60 }
  0x92   : > { %4295 = vmatprep.mubr.msk.f32.mxu0 %vm418_vm3, %v5014_v58 }
  0x94   : > { %4070 = vmatmul.mubr.msk.f32.gmra.mrb[26].mxu1 %vm418_vm3, %v5244_v37 }
  0x95   : > { %4296 = vmatmul.mubr.msk.f32.gmra.mrb[10].mxu0 %vm418_vm3, %v5017_v59  ;;  %4072 = vmatprep.mubr.msk.f32.mxu1 %vm418_vm3, %v5276_v40 }
  0x96   : > { %4298 = vmatprep.mubr.msk.f32.mxu0 %vm418_vm3, %v5045_v6 }
  0x98   : > { %4073 = vmatmul.mubr.msk.f32.gmra.mrb[28].mxu1 %vm418_vm3, %v5279_v45 }
  0x99   : > { %4299 = vmatmul.mubr.msk.f32.gmra.mrb[12].mxu0 %vm418_vm3, %v5048_v7  ;;  %4075 = vmatprep.mubr.msk.f32.mxu1 %vm418_vm3, %v5311_v53 }
  0x9a   : > { %4301 = vmatprep.mubr.msk.f32.mxu0 %vm418_vm3, %v5601_v10 }
  0x9c   : > { %4076 = vmatmul.mubr.msk.f32.gmra.mrb[30].mxu1 %vm418_vm3, %v5314_v28 }
  0x9d   : > { %4302 = vmatmul.mubr.msk.f32.gmra.mrb[14].mxu0 %vm418_vm3, %v5615_v17  ;;  %4080 = vmatprep.mubr.msk.f32.mxu1 %vm418_vm3, %v1007_v3  ;;  %v6219_v3 = vld [vmem:[#allocation40_spill] sm:$0xff] }
  0x9e   : > { %4304 = vmatprep.mubr.msk.f32.mxu0 %vm418_vm3, %v5129_v0 }
  0xa0   : > { %4081 = vmatmul.mubr.msk.f32.vlgmr.msra.gmra.mrb[0].mxu1 %vm418_vm3, %v1009_v4  ;;  %v6220_v4 = vld [vmem:[#allocation42_spill] sm:$0xff] }
  0xa1   : > { %4305 = vmatmul.mubr.msk.f32.gmra.mrb[16].mxu0 %vm418_vm3, %v5132_v11  ;;  %4129 = vmatpush3.msk.msra.mxu1 %vm483_vm1, %v5409_v38  ;;  %v6213_v38 = vld [vmem:[#allocation25_spill] sm:$0xff] }
  0xa2   : > { %4083 = vmatprep.mubr.msk.f32.mxu1 %vm418_vm3, %v5124_v56  ;;  %4307 = vmatprep.mubr.msk.f32.mxu0 %vm418_vm3, %v5163_v46  ;;  %v6214_v56 = vld [vmem:[#allocation27_spill] sm:$0xff] }
  0xa3   : > { %4445 = vmatprep.subr.msk.mxu1 %vm483_vm1, %v4858_v2 }
  0xa4   : > { %4084 = vmatmul.mubr.msk.f32.gmra.mrb[2].mxu1 %vm418_vm3, %v5142_v27  ;;  %v6215_v27 = vld [vmem:[#allocation29_spill] sm:$0xff] }
  0xa5   : > { %4308 = vmatmul.mubr.msk.f32.gmra.mrb[18].mxu0 %vm418_vm3, %v5166_v14  ;;  %4086 = vmatprep.mubr.msk.f32.mxu1 %vm418_vm3, %v6212_v13 }
  0xa6   : > { %4310 = vmatprep.mubr.msk.f32.mxu0 %vm418_vm3, %v5204_v16 }
  0xa8   : > { %4087 = vmatmul.mubr.msk.f32.gmra.mrb[4].mxu1 %vm418_vm3, %v6213_v38 }
  0xa9   : > { %4311 = vmatmul.mubr.msk.f32.gmra.mrb[20].mxu0 %vm418_vm3, %v5207_v23  ;;  %4089 = vmatprep.mubr.msk.f32.mxu1 %vm418_vm3, %v6214_v56 }
  0xaa   : > { %4313 = vmatprep.mubr.msk.f32.mxu0 %vm418_vm3, %v5241_v60 }
  0xac   : > { %4090 = vmatmul.mubr.msk.f32.gmra.mrb[6].mxu1 %vm418_vm3, %v6215_v27 }
  0xad   : > { %4314 = vmatmul.mubr.msk.f32.gmra.mrb[22].mxu0 %vm418_vm3, %v5244_v37  ;;  %4092 = vmatprep.mubr.msk.f32.mxu1 %vm418_vm3, %v6216_v35  ;;  %v6223_v37 = vld [vmem:[#allocation19_spill] sm:$0xff] }
  0xae   : > { %4316 = vmatprep.mubr.msk.f32.mxu0 %vm418_vm3, %v5276_v40  ;;  %v6221_v40 = vld [vmem:[#allocation46_spill] sm:$0xff] }
  0xb0   : > { %4093 = vmatmul.mubr.msk.f32.gmra.mrb[8].mxu1 %vm418_vm3, %v6217_v36 }
  0xb1   : > { %4317 = vmatmul.mubr.msk.f32.gmra.mrb[24].mxu0 %vm418_vm3, %v5279_v45  ;;  %4095 = vmatprep.mubr.msk.f32.mxu1 %vm418_vm3, %v6218_v29  ;;  %v1046_v45 = vrot.slane %v5076_v22, 2  ;;  %v6224_v22 = vld [vmem:[#allocation7_spill] sm:$0xff] }
  0xb2   : > { %4319 = vmatprep.mubr.msk.f32.mxu0 %vm418_vm3, %v5311_v53  ;;  %v6222_v53 = vld [vmem:[#allocation48_spill] sm:$0xff] }
  0xb3   : > { %v1047_v21 = vsel %vm1004_vm4, %v1045_v48, %v1046_v45  ;;  %v6227_v48 = vld [vmem:[#allocation10_spill] sm:$0xff] }
  0xb4   : > { %4096 = vmatmul.mubr.msk.f32.gmra.mrb[10].mxu1 %vm418_vm3, %v6219_v3 }
  0xb5   : > { %4320 = vmatmul.mubr.msk.f32.gmra.mrb[26].mxu0 %vm418_vm3, %v5314_v28  ;;  %4098 = vmatprep.mubr.msk.f32.mxu1 %vm418_vm3, %v6220_v4  ;;  %v5691_v28 = vld [vmem:[%s4849_s24 + $0x1d0] sm:$0xff]  ;;  %v1048_v4 = vrot.slane %v6223_v37, 2  ;;  %v6226_v37 = vld [vmem:[#allocation9_spill] sm:$0xff] }
  0xb6   : > { %4322 = vmatprep.mubr.msk.f32.mxu0 %vm418_vm3, %v5484_v33 }
  0xb8   : > { %4099 = vmatmul.mubr.msk.f32.gmra.mrb[12].mxu1 %vm418_vm3, %v6221_v40  ;;  %v6225_v40 = vld [vmem:[#allocation8_spill] sm:$0xff] }
  0xb9   : > { %4323 = vmatmul.mubr.msk.f32.gmra.mrb[28].mxu0 %vm418_vm3, %v5487_v26  ;;  %4101 = vmatprep.mubr.msk.f32.mxu1 %vm418_vm3, %v6222_v53  ;;  %v1049_v53 = vsel %vm1004_vm4, %v1046_v45, %v1048_v4  ;;  %v6230_v45 = vld [vmem:[#allocation13_spill] sm:$0xff] }
  0xba   : > { %4325 = vmatprep.mubr.msk.f32.mxu0 %vm418_vm3, %v5678_v49  ;;  %v6234_v4 = vld [vmem:[#allocation17_spill] sm:$0xff] }
  0xbc   : > { %4102 = vmatmul.mubr.msk.f32.gmra.mrb[14].mxu1 %vm418_vm3, %v5357_v1 }
  0xbd   : > { %4326 = vmatmul.mubr.msk.f32.gmra.mrb[30].mxu0 %vm418_vm3, %v5691_v28  ;;  %4104 = vmatprep.mubr.msk.f32.mxu1 %vm418_vm3, %v1047_v21  ;;  %v2523_v21 = vrot.slane %v5601_v10, 1 }
  0xbe   : > { %4330 = vmatprep.mubr.msk.f32.mxu0 %vm418_vm3, %v6224_v22  ;;  %v2524_v22 = vrot.slane %v5615_v17, 1 }
  0xc0   : > { %4105 = vmatmul.mubr.msk.f32.gmra.mrb[16].mxu1 %vm418_vm3, %v1049_v53  ;;  %v6228_v53 = vld [vmem:[#allocation11_spill] sm:$0xff] }
  0xc1   : > { %4331 = vmatmul.mubr.msk.f32.vlgmr.msra.gmra.mrb[0].mxu0 %vm418_vm3, %v6225_v40  ;;  %4107 = vmatprep.mubr.msk.f32.mxu1 %vm418_vm3, %v5385_v30  ;;  %v6229_v40 = vld [vmem:[#allocation12_spill] sm:$0xff]  ;;  %v6231_v30 = vld [vmem:[#allocation14_spill] sm:$0xff] }
  0xc2   : > { %4379 = vmatpush3.msk.msra.mxu0 %vm483_vm1, %v5546_v15  ;;  %4333 = vmatprep.mubr.msk.f32.mxu0 %vm418_vm3, %v6226_v37  ;;  %v6233_v15 = vld [vmem:[#allocation16_spill] sm:$0xff]  ;;  %v5747_v37 = vld [vmem:[%s4849_s24 + $0xe8] sm:$0x3] }
  0xc4   : > { %4108 = vmatmul.mubr.msk.f32.gmra.mrb[18].mxu1 %vm418_vm3, %v5398_v55  ;;  %v6232_v55 = vld [vmem:[#allocation15_spill] sm:$0xff] }
  0xc5   : > { %4334 = vmatmul.mubr.msk.f32.gmra.mrb[2].mxu0 %vm418_vm3, %v6227_v48  ;;  %4110 = vmatprep.mubr.msk.f32.mxu1 %vm418_vm3, %v5404_v54  ;;  %v6235_v48 = vld [vmem:[#allocation18_spill] sm:$0xff] }
  0xc6   : > { %4336 = vmatprep.mubr.msk.f32.mxu0 %vm418_vm3, %v6228_v53  ;;  %v6236_v53 = vld [vmem:[#allocation20_spill] sm:$0xff] }
  0xc8   : > { %4111 = vmatmul.mubr.msk.f32.gmra.mrb[20].mxu1 %vm418_vm3, %v5420_v47 }
  0xc9   : > { %4337 = vmatmul.mubr.msk.f32.gmra.mrb[4].mxu0 %vm418_vm3, %v6229_v40  ;;  %4113 = vmatprep.mubr.msk.f32.mxu1 %vm418_vm3, %v5426_v43  ;;  %v2526_v40 = vrot.slane %v5747_v37, 1 }
  0xca   : > { %4339 = vmatprep.mubr.msk.f32.mxu0 %vm418_vm3, %v6230_v45  ;;  %v2525_v45 = vsel %vm335_vm2, %v2523_v21, %v2524_v22  ;;  %v6240_v21 = vld [vmem:[#allocation28_spill] sm:$0xff] }
  0xcc   : > { %4114 = vmatmul.mubr.msk.f32.gmra.mrb[22].mxu1 %vm418_vm3, %v5441_v5 }
  0xcd   : > { %4340 = vmatmul.mubr.msk.f32.gmra.mrb[6].mxu0 %vm418_vm3, %v6231_v30  ;;  %4116 = vmatprep.mubr.msk.f32.mxu1 %vm418_vm3, %v5445_v12  ;;  %v6237_v30 = vld [vmem:[#allocation21_spill] sm:$0xff] }
  0xce   : > { %4342 = vmatprep.mubr.msk.f32.mxu0 %vm418_vm3, %v6232_v55  ;;  %v2527_v55 = vsel %vm335_vm2, %v2524_v22, %v2526_v40  ;;  %v6241_v22 = vld [vmem:[#allocation30_spill] sm:$0xff]  ;;  %v2528_v40 = vrot.slane %v5678_v49, 1 }
  0xd0   : > { %4117 = vmatmul.mubr.msk.f32.gmra.mrb[24].mxu1 %vm418_vm3, %v5458_v62 }
  0xd1   : > { %4343 = vmatmul.mubr.msk.f32.gmra.mrb[8].mxu0 %vm418_vm3, %v6233_v15  ;;  %4119 = vmatprep.mubr.msk.f32.mxu1 %vm418_vm3, %v5462_v61  ;;  %v6238_v15 = vld [vmem:[#allocation26_spill] sm:$0xff] }
  0xd2   : > { %4345 = vmatprep.mubr.msk.f32.mxu0 %vm418_vm3, %v6234_v4  ;;  %v6239_v4 = vld [vmem:[#allocation6_spill] sm:$0xff] }
  0xd4   : > { %4120 = vmatmul.mubr.msk.f32.gmra.mrb[26].mxu1 %vm418_vm3, %v5475_v52 }
  0xd5   : > { %4346 = vmatmul.mubr.msk.f32.gmra.mrb[10].mxu0 %vm418_vm3, %v6235_v48  ;;  %4122 = vmatprep.mubr.msk.f32.mxu1 %vm418_vm3, %v5479_v63  ;;  %v6243_v48 = vld [vmem:[#allocation35_spill] sm:$0xff] }
  0xd6   : > { %4348 = vmatprep.mubr.msk.f32.mxu0 %vm418_vm3, %v6236_v53  ;;  %v6248_v53 = vld [vmem:[#allocation49_spill] sm:$0xff] }
  0xd8   : > { %4123 = vmatmul.mubr.msk.f32.gmra.mrb[28].mxu1 %vm418_vm3, %v5498_v57 }
  0xd9   : > { %4349 = vmatmul.mubr.msk.f32.gmra.mrb[12].mxu0 %vm418_vm3, %v6237_v30  ;;  %4125 = vmatprep.mubr.msk.f32.mxu1 %vm418_vm3, %v5502_v34 }
  0xda   : > { %4351 = vmatprep.mubr.msk.f32.mxu0 %vm418_vm3, %v2525_v45  ;;  %v2529_v45 = vrot.slane %v5691_v28, 1 }
  0xdc   : > { %4126 = vmatmul.mubr.msk.f32.gmra.mrb[30].mxu1 %vm418_vm3, %v5518_v24 }
  0xdd   : > { %4352 = vmatmul.mubr.msk.f32.gmra.mrb[14].mxu0 %vm418_vm3, %v2527_v55  ;;  %4130 = vmatprep.mubr.msk.f32.mxu1 %vm418_vm3, %v4878_v8  ;;  %v6242_v8 = vld [vmem:[#allocation33_spill] sm:$0xff]  ;;  %v5825_v55 = vld [vmem:[%s4849_s24 + $0x1d8] sm:$0x3] }
  0xde   : > { %4354 = vmatprep.mubr.msk.f32.mxu0 %vm418_vm3, %v6238_v15 }
  0xe0   : > { %4131 = vmatmul.mubr.msk.f32.vlgmr.msra.gmra.mrb[0].mxu1 %vm418_vm3, %v6239_v4  ;;  %v2530_v4 = vsel %vm335_vm2, %v2528_v40, %v2529_v45 }
  0xe1   : > { %4355 = vmatmul.mubr.msk.f32.gmra.mrb[16].mxu0 %vm418_vm3, %v6240_v21  ;;  %4446 = vmatpush3.msk.msra.mxu1 %vm483_vm1, %v4858_v2  ;;  %v6244_v2 = vld [vmem:[#allocation39_spill] sm:$0xff] }
  0xe2   : > { %4133 = vmatprep.mubr.msk.f32.mxu1 %vm418_vm3, %v4900_v18  ;;  %4357 = vmatprep.mubr.msk.f32.mxu0 %vm418_vm3, %v6241_v22  ;;  %v6245_v18 = vld [vmem:[#allocation41_spill] sm:$0xff] }
  0xe4   : > { %4134 = vmatmul.mubr.msk.f32.gmra.mrb[2].mxu1 %vm418_vm3, %v4903_v19  ;;  %v6246_v19 = vld [vmem:[#allocation45_spill] sm:$0xff] }
  0xe5   : > { %4358 = vmatmul.mubr.msk.f32.gmra.mrb[18].mxu0 %vm418_vm3, %v6242_v8  ;;  %4136 = vmatprep.mubr.msk.f32.mxu1 %vm418_vm3, %v4906_v20  ;;  %v6247_v20 = vld [vmem:[#allocation47_spill] sm:$0xff] }
  0xe6   : > { %4360 = vmatprep.mubr.msk.f32.mxu0 %vm418_vm3, %v6243_v48 }
  0xe8   : > { %4137 = vmatmul.mubr.msk.f32.gmra.mrb[4].mxu1 %vm418_vm3, %v4916_v25  ;;  %v1692_v25 = vrot.slane %v5484_v33, 1 }
  0xe9   : > { %4361 = vmatmul.mubr.msk.f32.gmra.mrb[20].mxu0 %vm418_vm3, %v6244_v2  ;;  %4139 = vmatprep.mubr.msk.f32.mxu1 %vm418_vm3, %v4927_v31  ;;  %v1693_v31 = vrot.slane %v5487_v26, 1 }
  0xea   : > { %4363 = vmatprep.mubr.msk.f32.mxu0 %vm418_vm3, %v6245_v18 }
  0xeb   : > { %v5822_v30 = vsel %vm335_vm2, %v1692_v25, %v1693_v31 }
  0xec   : > { %4140 = vmatmul.mubr.msk.f32.gmra.mrb[6].mxu1 %vm418_vm3, %v4930_v32  ;;  %v6249_v32 = vld [vmem:[#allocation50_spill] sm:$0xff] }
  0xed   : > { %4364 = vmatmul.mubr.msk.f32.gmra.mrb[22].mxu0 %vm418_vm3, %v6246_v19  ;;  %4142 = vmatprep.mubr.msk.f32.mxu1 %vm418_vm3, %v4956_v41  ;;  %v1695_v41 = vrot.slane %v5507_v9, 1 }
  0xee   : > { %4366 = vmatprep.mubr.msk.f32.mxu0 %vm418_vm3, %v6247_v20 }
  0xef   : > { %v5836_v9 = vsel %vm335_vm2, %v1693_v31, %v1695_v41 }
  0xf0   : > { %4143 = vmatmul.mubr.msk.f32.gmra.mrb[8].mxu1 %vm418_vm3, %v4959_v42  ;;  %v6250_v42 = vld [vmem:[#allocation52_spill] sm:$0xff] }
  0xf1   : > { %4367 = vmatmul.mubr.msk.f32.gmra.mrb[24].mxu0 %vm418_vm3, %v6248_v53  ;;  %4145 = vmatprep.mubr.msk.f32.mxu1 %vm418_vm3, %v4986_v50  ;;  %v2531_v50 = vrot.slane %v5825_v55, 1 }
  0xf2   : > { %4369 = vmatprep.mubr.msk.f32.mxu0 %vm418_vm3, %v6249_v32 }
  0xf4   : > { %4146 = vmatmul.mubr.msk.f32.gmra.mrb[10].mxu1 %vm418_vm3, %v4989_v51  ;;  %v2532_v51 = vsel %vm335_vm2, %v2529_v45, %v2531_v50 }
  0xf5   : > { %4370 = vmatmul.mubr.msk.f32.gmra.mrb[26].mxu0 %vm418_vm3, %v6250_v42  ;;  %4148 = vmatprep.mubr.msk.f32.mxu1 %vm418_vm3, %v5014_v58  ;;  %v6251_v58 = vld [vmem:[#allocation42_spill] sm:$0xff] }
  0xf6   : > { %4372 = vmatprep.mubr.msk.f32.mxu0 %vm418_vm3, %v5822_v30 }
  0xf8   : > { %4149 = vmatmul.mubr.msk.f32.gmra.mrb[12].mxu1 %vm418_vm3, %v5017_v59  ;;  %v6252_v59 = vld [vmem:[#allocation32_spill] sm:$0xff] }
  0xf9   : > { %4373 = vmatmul.mubr.msk.f32.gmra.mrb[28].mxu0 %vm418_vm3, %v5836_v9  ;;  %4151 = vmatprep.mubr.msk.f32.mxu1 %vm418_vm3, %v5045_v6  ;;  %v6253_v6 = vld [vmem:[#allocation46_spill] sm:$0xff] }
  0xfa   : > { %4375 = vmatprep.mubr.msk.f32.mxu0 %vm418_vm3, %v2530_v4 }
  0xfc   : > { %4152 = vmatmul.mubr.msk.f32.gmra.mrb[14].mxu1 %vm418_vm3, %v5048_v7  ;;  %v6254_v7 = vld [vmem:[#allocation37_spill] sm:$0xff] }
  0xfd   : > { %4376 = vmatmul.mubr.msk.f32.gmra.mrb[30].mxu0 %vm418_vm3, %v2532_v51  ;;  %4154 = vmatprep.mubr.msk.f32.mxu1 %vm418_vm3, %v5101_v39  ;;  %v6255_v39 = vld [vmem:[#allocation48_spill] sm:$0xff] }
  0xfe   : > { %4380 = vmatprep.mubr.msk.f32.mxu0 %vm418_vm3, %v6212_v13  ;;  %v6262_v13 = vld [vmem:[#allocation24_spill] sm:$0xff] }
 0x100   : > { %4155 = vmatmul.mubr.msk.f32.gmra.mrb[16].mxu1 %vm418_vm3, %v5104_v44  ;;  %v2803_v44 = vrot.slane %v5601_v10, 2  ;;  %v6260_v10 = vld [vmem:[#allocation53_spill] sm:$0xff] }
 0x101   : > { %4381 = vmatmul.mubr.msk.f32.vlgmr.msra.gmra.mrb[0].mxu0 %vm418_vm3, %v6213_v38  ;;  %4157 = vmatprep.mubr.msk.f32.mxu1 %vm418_vm3, %v5129_v0  ;;  %v2804_v0 = vrot.slane %v5615_v17, 2  ;;  %v6261_v17 = vld [vmem:[#allocation22_spill] sm:$0xff] }
 0x102   : > { %4383 = vmatprep.mubr.msk.f32.mxu0 %vm418_vm3, %v6214_v56 }
 0x104   : > { %4158 = vmatmul.mubr.msk.f32.gmra.mrb[18].mxu1 %vm418_vm3, %v5132_v11  ;;  %v6257_v11 = vld [vmem:[#allocation43_spill] sm:$0xff] }
 0x105   : > { %4384 = vmatmul.mubr.msk.f32.gmra.mrb[2].mxu0 %vm418_vm3, %v6215_v27  ;;  %4160 = vmatprep.mubr.msk.f32.mxu1 %vm418_vm3, %v5163_v46  ;;  %v6258_v46 = vld [vmem:[#allocation51_spill] sm:$0xff] }
 0x106   : > { %4386 = vmatprep.mubr.msk.f32.mxu0 %vm418_vm3, %v6216_v35 }
 0x108   : > { %4161 = vmatmul.mubr.msk.f32.gmra.mrb[20].mxu1 %vm418_vm3, %v5166_v14  ;;  %v2806_v14 = vrot.slane %v5747_v37, 2 }
 0x109   : > { %4387 = vmatmul.mubr.msk.f32.gmra.mrb[4].mxu0 %vm418_vm3, %v6217_v36  ;;  %4163 = vmatprep.mubr.msk.f32.mxu1 %vm418_vm3, %v5204_v16  ;;  %v2805_v16 = vsel %vm1004_vm4, %v2803_v44, %v2804_v0 }
 0x10a   : > { %4389 = vmatprep.mubr.msk.f32.mxu0 %vm418_vm3, %v6218_v29 }
 0x10c   : > { %4164 = vmatmul.mubr.msk.f32.gmra.mrb[22].mxu1 %vm418_vm3, %v5207_v23  ;;  %v6259_v23 = vld [vmem:[#allocation44_spill] sm:$0xff] }
 0x10d   : > { %4390 = vmatmul.mubr.msk.f32.gmra.mrb[6].mxu0 %vm418_vm3, %v6219_v3  ;;  %4166 = vmatprep.mubr.msk.f32.mxu1 %vm418_vm3, %v5241_v60  ;;  %v6256_v60 = vld [vmem:[#allocation38_spill] sm:$0xff] }
 0x10e   : > { %4392 = vmatprep.mubr.msk.f32.mxu0 %vm418_vm3, %v6251_v58 }
 0x110   : > { %4167 = vmatmul.mubr.msk.f32.gmra.mrb[24].mxu1 %vm418_vm3, %v6252_v59 }
 0x111   : > { %4393 = vmatmul.mubr.msk.f32.gmra.mrb[8].mxu0 %vm418_vm3, %v6253_v6  ;;  %4169 = vmatprep.mubr.msk.f32.mxu1 %vm418_vm3, %v6254_v7 }
 0x112   : > { %4395 = vmatprep.mubr.msk.f32.mxu0 %vm418_vm3, %v6255_v39 }
 0x114   : > { %4170 = vmatmul.mubr.msk.f32.gmra.mrb[26].mxu1 %vm418_vm3, %v6256_v60 }
 0x115   : > { %4396 = vmatmul.mubr.msk.f32.gmra.mrb[10].mxu0 %vm418_vm3, %v5357_v1  ;;  %4172 = vmatprep.mubr.msk.f32.mxu1 %vm418_vm3, %v6257_v11  ;;  %v2807_v1 = vsel %vm1004_vm4, %v2804_v0, %v2806_v14 }
 0x116   : > { %4398 = vmatprep.mubr.msk.f32.mxu0 %vm418_vm3, %v6258_v46 }
 0x118   : > { %4173 = vmatmul.mubr.msk.f32.gmra.mrb[28].mxu1 %vm418_vm3, %v6259_v23 }
 0x119   : > { %4399 = vmatmul.mubr.msk.f32.gmra.mrb[12].mxu0 %vm418_vm3, %v6260_v10  ;;  %4175 = vmatprep.mubr.msk.f32.mxu1 %vm418_vm3, %v5484_v33  ;;  %v2809_v33 = vrot.slane %v5691_v28, 2  ;;  %v6264_v28 = vld [vmem:[#allocation55_spill] sm:$0xff] }
 0x11a   : > { %4401 = vmatprep.mubr.msk.f32.mxu0 %vm418_vm3, %v2805_v16 }
 0x11c   : > { %4176 = vmatmul.mubr.msk.f32.gmra.mrb[30].mxu1 %vm418_vm3, %v5487_v26  ;;  %v2808_v26 = vrot.slane %v5678_v49, 2 }
 0x11d   : > { %4402 = vmatmul.mubr.msk.f32.gmra.mrb[14].mxu0 %vm418_vm3, %v2807_v1  ;;  %4204 = vmatprep.mubr.msk.f32.mxu1 %vm418_vm3, %v6261_v17 }
 0x11e   : > { %4404 = vmatprep.mubr.msk.f32.mxu0 %vm418_vm3, %v5404_v54  ;;  %v6263_v54 = vld [vmem:[#allocation54_spill] sm:$0xff] }
 0x120   : > { %4205 = vmatmul.mubr.msk.f32.vlgmr.msra.gmra.mrb[16].mxu1 %vm418_vm3, %v6262_v13 }
 0x121   : > { %4405 = vmatmul.mubr.msk.f32.gmra.mrb[16].mxu0 %vm418_vm3, %v5420_v47  ;;  %4207 = vmatprep.mubr.msk.f32.mxu1 %vm418_vm3, %v6238_v15  ;;  %v2811_v47 = vrot.slane %v5825_v55, 2 }
 0x122   : > { %4407 = vmatprep.mubr.msk.f32.mxu0 %vm418_vm3, %v5426_v43  ;;  %v2810_v43 = vsel %vm1004_vm4, %v2808_v26, %v2809_v33 }
 0x124   : > { %4208 = vmatmul.mubr.msk.f32.gmra.mrb[18].mxu1 %vm418_vm3, %v6240_v21 }
 0x125   : > { %4408 = vmatmul.mubr.msk.f32.gmra.mrb[18].mxu0 %vm418_vm3, %v5441_v5  ;;  %4210 = vmatprep.mubr.msk.f32.mxu1 %vm418_vm3, %v6241_v22  ;;  %v2812_v5 = vsel %vm1004_vm4, %v2809_v33, %v2811_v47 }
 0x126   : > { %4410 = vmatprep.mubr.msk.f32.mxu0 %vm418_vm3, %v5445_v12 }
 0x128   : > { %4211 = vmatmul.mubr.msk.f32.gmra.mrb[20].mxu1 %vm418_vm3, %v6242_v8 }
 0x129   : > { %4411 = vmatmul.mubr.msk.f32.gmra.mrb[20].mxu0 %vm418_vm3, %v5458_v62  ;;  %4213 = vmatprep.mubr.msk.f32.mxu1 %vm418_vm3, %v6243_v48 }
 0x12a   : > { %4413 = vmatprep.mubr.msk.f32.mxu0 %vm418_vm3, %v5462_v61 }
 0x12c   : > { %4214 = vmatmul.mubr.msk.f32.gmra.mrb[22].mxu1 %vm418_vm3, %v6244_v2 }
 0x12d   : > { %4414 = vmatmul.mubr.msk.f32.gmra.mrb[22].mxu0 %vm418_vm3, %v5475_v52  ;;  %4216 = vmatprep.mubr.msk.f32.mxu1 %vm418_vm3, %v6245_v18 }
 0x12e   : > { %4416 = vmatprep.mubr.msk.f32.mxu0 %vm418_vm3, %v5479_v63 }
 0x130   : > { %4217 = vmatmul.mubr.msk.f32.gmra.mrb[24].mxu1 %vm418_vm3, %v6246_v19 }
 0x131   : > { %4417 = vmatmul.mubr.msk.f32.gmra.mrb[24].mxu0 %vm418_vm3, %v5498_v57  ;;  %4219 = vmatprep.mubr.msk.f32.mxu1 %vm418_vm3, %v6247_v20 }
 0x132   : > { %4419 = vmatprep.mubr.msk.f32.mxu0 %vm418_vm3, %v5502_v34 }
 0x134   : > { %4220 = vmatmul.mubr.msk.f32.gmra.mrb[26].mxu1 %vm418_vm3, %v6248_v53 }
 0x135   : > { %4420 = vmatmul.mubr.msk.f32.gmra.mrb[26].mxu0 %vm418_vm3, %v5518_v24  ;;  %4222 = vmatprep.mubr.msk.f32.mxu1 %vm418_vm3, %v6249_v32 }
 0x136   : > { %4422 = vmatprep.mubr.msk.f32.mxu0 %vm418_vm3, %v6263_v54 }
 0x138   : > { %4223 = vmatmul.mubr.msk.f32.gmra.mrb[28].mxu1 %vm418_vm3, %v6250_v42 }
 0x139   : > { %4423 = vmatmul.mubr.msk.f32.gmra.mrb[28].mxu0 %vm418_vm3, %v6264_v28  ;;  %4225 = vmatprep.mubr.msk.f32.mxu1 %vm418_vm3, %v5822_v30 }
 0x13a   : > { %4425 = vmatprep.mubr.msk.f32.mxu0 %vm418_vm3, %v2810_v43 }
 0x13c   : > { %4226 = vmatmul.mubr.msk.f32.gmra.mrb[30].mxu1 %vm418_vm3, %v5836_v9 }
 0x13d   : > { %4426 = vmatmul.mubr.msk.f32.gmra.mrb[30].mxu0 %vm418_vm3, %v2812_v5 }
 0x1b3   : > { %v4132_v12 = vpop.f32.mrb[0].mxu1 }
 0x1b4   : > { %v1494_v62 = vpop.f32.mrb[1].mxu1 }
 0x1b7   : > { %v4135_v61 = vpop.f32.mrb[2].mxu1 }
 0x1b8   : > { %v1504_v52 = vpop.f32.mrb[3].mxu1 }
 0x1bb   : > { %v4138_v63 = vpop.f32.mrb[4].mxu1 }
 0x1bc   : > { %v1514_v57 = vpop.f32.mrb[5].mxu1 }
 0x1bf   : > { %v4141_v34 = vpop.f32.mrb[6].mxu1 }
 0x1c0   : > { %v1524_v24 = vpop.f32.mrb[7].mxu1 }
 0x1c3   : > { %v4144_v49 = vpop.f32.mrb[8].mxu1 }
 0x1c4   : > { %v1534_v38 = vpop.f32.mrb[9].mxu1 }
 0x1c7   : > { %v4147_v56 = vpop.f32.mrb[10].mxu1 }
 0x1c8   : > { %v1544_v27 = vpop.f32.mrb[11].mxu1 }
 0x1cb   : > { %v4150_v35 = vpop.f32.mrb[12].mxu1 }
 0x1cc   : > { %v5985_v36 = vpop.f32.mrb[13].mxu1 }
 0x1cf   : > { %v5987_v29 = vpop.f32.mrb[14].mxu1 }
 0x1d0   : > { %v5989_v3 = vpop.f32.mrb[15].mxu1 }
 0x1d4   : > { %v4382_v37 = vpop.f32.mrb[0].mxu0 }
 0x1d5   : > { %v4447_v15 = vadd.f32 %v4382_v37, %v4132_v12  ;;  %v2892_v21 = vpop.f32.mrb[1].mxu0 }
 0x1d6   : > { %v4448_v22 = vadd.f32 %v2892_v21, %v1494_v62 }
 0x1d7   : > { %v3084_v8 = vmax.f32 %v4447_v15, 0.0 }
 0x1d8   : > { %v3083_v48 = vmax.f32 %v4448_v22, 0.0  ;;  %v4385_v2 = vpop.f32.mrb[2].mxu0 }
 0x1d9   : > { %v3118_v18 = vsel %vm3116_vm5, %v3084_v8, 0.0  ;;  %v4449_v19 = vadd.f32 %v4385_v2, %v4135_v61  ;;  %v2902_v20 = vpop.f32.mrb[3].mxu0 }
 0x1da   : > { %v3117_v25 = vsel %vm3116_vm5, %v3083_v48, 0.0  ;;  %v4450_v31 = vadd.f32 %v2902_v20, %v1504_v52 }
 0x1db   : > { %v3119_v53 = vadd.f32 %v3118_v18, %v3117_v25  ;;  %v3086_v32 = vmax.f32 %v4449_v19, 0.0 }
 0x1dc   : > { %v3085_v41 = vmax.f32 %v4450_v31, 0.0  ;;  %v4388_v40 = vpop.f32.mrb[4].mxu0 }
 0x1dd   : > { %v4451_v45 = vadd.f32 %v4388_v40, %v4138_v63  ;;  %v2912_v30 = vpop.f32.mrb[5].mxu0  ;;  %v3122_v50 = vsel %vm3116_vm5, %v3086_v32, 0.0 }
 0x1de   : > { %v3120_v55 = vsel %vm3116_vm5, %v3085_v41, 0.0  ;;  %v4452_v42 = vadd.f32 %v2912_v30, %v1514_v57 }
 0x1df   : > { %v3121_v9 = vadd.f32 %v3120_v55, %v3119_v53  ;;  %v3088_v4 = vmax.f32 %v4451_v45, 0.0 }
 0x1e0   : > { %v3087_v51 = vmax.f32 %v4452_v42, 0.0  ;;  %v4391_v58 = vpop.f32.mrb[6].mxu0 }
 0x1e1   : > { %v3123_v59 = vadd.f32 %v3122_v50, %v3121_v9  ;;  %v4453_v6 = vadd.f32 %v4391_v58, %v4141_v34  ;;  %v2922_v7 = vpop.f32.mrb[7].mxu0  ;;  %v3126_v60 = vsel %vm3116_vm5, %v3088_v4, 0.0 }
 0x1e2   : > { %v3124_v39 = vsel %vm3116_vm5, %v3087_v51, 0.0  ;;  %v4454_v44 = vadd.f32 %v2922_v7, %v1524_v24 }
 0x1e3   : > { %v3125_v0 = vadd.f32 %v3124_v39, %v3123_v59  ;;  %v3090_v11 = vmax.f32 %v4453_v6, 0.0 }
 0x1e4   : > { %v3089_v46 = vmax.f32 %v4454_v44, 0.0  ;;  %v4394_v14 = vpop.f32.mrb[8].mxu0 }
 0x1e5   : > { %v3127_v16 = vadd.f32 %v3126_v60, %v3125_v0  ;;  %v4455_v23 = vadd.f32 %v4394_v14, %v4144_v49  ;;  %v2932_v10 = vpop.f32.mrb[9].mxu0  ;;  %v3130_v26 = vsel %vm3116_vm5, %v3090_v11, 0.0 }
 0x1e6   : > { %v3128_v1 = vsel %vm3116_vm5, %v3089_v46, 0.0  ;;  %v4456_v17 = vadd.f32 %v2932_v10, %v1534_v38 }
 0x1e7   : > { %v3129_v13 = vadd.f32 %v3128_v1, %v3127_v16  ;;  %v3092_v33 = vmax.f32 %v4455_v23, 0.0 }
 0x1e8   : > { %v3091_v54 = vmax.f32 %v4456_v17, 0.0  ;;  %v4397_v47 = vpop.f32.mrb[10].mxu0 }
 0x1e9   : > { %v3131_v43 = vadd.f32 %v3130_v26, %v3129_v13  ;;  %v4457_v28 = vadd.f32 %v4397_v47, %v4147_v56  ;;  %v2942_v5 = vpop.f32.mrb[11].mxu0  ;;  %v3134_v52 = vsel %vm3116_vm5, %v3092_v33, 0.0 }
 0x1ea   : > { %v3132_v12 = vsel %vm3116_vm5, %v3091_v54, 0.0  ;;  %v4458_v62 = vadd.f32 %v2942_v5, %v1544_v27 }
 0x1eb   : > { %v3133_v61 = vadd.f32 %v3132_v12, %v3131_v43  ;;  %v3094_v63 = vmax.f32 %v4457_v28, 0.0 }
 0x1ec   : > { %v3093_v57 = vmax.f32 %v4458_v62, 0.0  ;;  %v4400_v34 = vpop.f32.mrb[12].mxu0 }
 0x1ed   : > { %v3135_v24 = vadd.f32 %v3134_v52, %v3133_v61  ;;  %v4459_v49 = vadd.f32 %v4400_v34, %v4150_v35  ;;  %v2952_v38 = vpop.f32.mrb[13].mxu0  ;;  %v3138_v56 = vsel %vm3116_vm5, %v3094_v63, 0.0 }
 0x1ee   : > { %v3136_v37 = vsel %vm3116_vm5, %v3093_v57, 0.0  ;;  %v4460_v15 = vadd.f32 %v2952_v38, %v5985_v36 }
 0x1ef   : > { %v3137_v21 = vadd.f32 %v3136_v37, %v3135_v24  ;;  %v3096_v22 = vmax.f32 %v4459_v49, 0.0 }
 0x1f0   : > { %v3095_v8 = vmax.f32 %v4460_v15, 0.0  ;;  %v4403_v48 = vpop.f32.mrb[14].mxu0 }
 0x1f1   : > { %v3139_v27 = vadd.f32 %v3138_v56, %v3137_v21  ;;  %v4461_v2 = vadd.f32 %v4403_v48, %v5987_v29  ;;  %v2962_v18 = vpop.f32.mrb[15].mxu0  ;;  %v3142_v25 = vsel %vm3116_vm5, %v3096_v22, 0.0 }
 0x1f2   : > { %v3140_v19 = vsel %vm3116_vm5, %v3095_v8, 0.0  ;;  %v4462_v20 = vadd.f32 %v2962_v18, %v5989_v3 }
 0x1f3   : > { %v3141_v35 = vadd.f32 %v3140_v19, %v3139_v27  ;;  %v3098_v31 = vmax.f32 %v4461_v2, 0.0  ;;  %v4206_v36 = vpop.f32.mrb[16].mxu1 }
 0x1f4   : > { %v3097_v53 = vmax.f32 %v4462_v20, 0.0  ;;  %v4406_v32 = vpop.f32.mrb[16].mxu0  ;;  %v1856_v45 = vpop.f32.mrb[17].mxu1 }
 0x1f5   : > { %v3143_v41 = vadd.f32 %v3142_v25, %v3141_v35  ;;  %v4463_v40 = vadd.f32 %v4406_v32, %v4206_v36  ;;  %v2972_v30 = vpop.f32.mrb[17].mxu0  ;;  %v3146_v50 = vsel %vm3116_vm5, %v3098_v31, 0.0 }
 0x1f6   : > { %v3144_v55 = vsel %vm3116_vm5, %v3097_v53, 0.0  ;;  %v4464_v42 = vadd.f32 %v2972_v30, %v1856_v45 }
 0x1f7   : > { %v3145_v29 = vadd.f32 %v3144_v55, %v3143_v41  ;;  %v3100_v9 = vmax.f32 %v4463_v40, 0.0  ;;  %v4209_v3 = vpop.f32.mrb[18].mxu1 }
 0x1f8   : > { %v3099_v4 = vmax.f32 %v4464_v42, 0.0  ;;  %v4409_v51 = vpop.f32.mrb[18].mxu0  ;;  %v1866_v7 = vpop.f32.mrb[19].mxu1 }
 0x1f9   : > { %v6010_v58 = vadd.f32 %v3146_v50, %v3145_v29  ;;  %v3155_v59 = vsel %vm3116_vm5, %v3100_v9, 0.0  ;;  %v4465_v6 = vadd.f32 %v4409_v51, %v4209_v3  ;;  %v2982_v39 = vpop.f32.mrb[19].mxu0 }
 0x1fa   : > { %v3154_v44 = vsel %vm3116_vm5, %v3099_v4, 0.0  ;;  %v4466_v0 = vadd.f32 %v2982_v39, %v1866_v7 }
 0x1fb   : > { %v3156_v60 = vadd.f32 %v3155_v59, %v3154_v44  ;;  %v3102_v11 = vmax.f32 %v4465_v6, 0.0  ;;  %v4212_v14 = vpop.f32.mrb[20].mxu1 }
 0x1fc   : > { %v3101_v46 = vmax.f32 %v4466_v0, 0.0  ;;  %v4412_v16 = vpop.f32.mrb[20].mxu0  ;;  %v1876_v10 = vpop.f32.mrb[21].mxu1 }
 0x1fd   : > { %v4467_v23 = vadd.f32 %v4412_v16, %v4212_v14  ;;  %v2992_v1 = vpop.f32.mrb[21].mxu0  ;;  %v3159_v33 = vsel %vm3116_vm5, %v3102_v11, 0.0  ;;  %v3148_v11 = vrot.slane %v6010_v58, 4 }
 0x1fe   : > { %v3157_v17 = vsel %vm3116_vm5, %v3101_v46, 0.0  ;;  %v4468_v13 = vadd.f32 %v2992_v1, %v1876_v10 }
 0x1ff   : > { %v3158_v26 = vadd.f32 %v3157_v17, %v3156_v60  ;;  %v3104_v54 = vmax.f32 %v4467_v23, 0.0  ;;  %v4215_v43 = vpop.f32.mrb[22].mxu1 }
 0x200   : > { %v3103_v47 = vmax.f32 %v4468_v13, 0.0  ;;  %v4415_v28 = vpop.f32.mrb[22].mxu0  ;;  %v1886_v62 = vpop.f32.mrb[23].mxu1 }
 0x201   : > { %v3160_v5 = vadd.f32 %v3159_v33, %v3158_v26  ;;  %v4469_v12 = vadd.f32 %v4415_v28, %v4215_v43  ;;  %v3002_v61 = vpop.f32.mrb[23].mxu0  ;;  %v3163_v34 = vsel %vm3116_vm5, %v3104_v54, 0.0  ;;  %v3149_v54 = vadd.f32 %v3148_v11, %v6010_v58 }
 0x202   : > { %v3161_v52 = vsel %vm3116_vm5, %v3103_v47, 0.0  ;;  %v4470_v63 = vadd.f32 %v3002_v61, %v1886_v62 }
 0x203   : > { %v3162_v57 = vadd.f32 %v3161_v52, %v3160_v5  ;;  %v3106_v24 = vmax.f32 %v4469_v12, 0.0  ;;  %v4218_v38 = vpop.f32.mrb[24].mxu1  ;;  %v3150_v12 = vrot.slane %v3149_v54, 2 }
 0x204   : > { %v3105_v49 = vmax.f32 %v4470_v63, 0.0  ;;  %v4418_v37 = vpop.f32.mrb[24].mxu0  ;;  %v1896_v56 = vpop.f32.mrb[25].mxu1 }
 0x205   : > { %v3164_v15 = vadd.f32 %v3163_v34, %v3162_v57  ;;  %v4471_v21 = vadd.f32 %v4418_v37, %v4218_v38  ;;  %v3012_v22 = vpop.f32.mrb[25].mxu0  ;;  %v3167_v2 = vsel %vm3116_vm5, %v3106_v24, 0.0  ;;  %v3151_v52 = vadd.f32 %v3150_v12, %v3149_v54  ;;  %v3115_v37 = vld [vmem:[#allocation2] sm:$0x3] }
 0x206   : > { %v3165_v8 = vsel %vm3116_vm5, %v3105_v49, 0.0  ;;  %v4472_v48 = vadd.f32 %v3012_v22, %v1896_v56  ;;  %v3205_v56 = vld [vmem:[%s6086_s2] sm:$0xff] (!%p3669_p6)  ;;  %v3206_v22 = vld [vmem:[%s6086_s2 + $0x8] sm:$0xff] (!%p3669_p6) }
 0x207   : > { %v3166_v27 = vadd.f32 %v3165_v8, %v3164_v15  ;;  %v3108_v18 = vmax.f32 %v4471_v21, 0.0  ;;  %v4221_v20 = vpop.f32.mrb[26].mxu1  ;;  %v3152_v34 = vrot.slane %v3151_v52, 1  ;;  %v3207_v8 = vld [vmem:[%s6086_s2 + $0x10] sm:$0xff] (!%p3669_p6) }
 0x208   : > { %v3107_v19 = vmax.f32 %v4472_v48, 0.0  ;;  %v4421_v35 = vpop.f32.mrb[26].mxu0  ;;  %v1906_v53 = vpop.f32.mrb[27].mxu1  ;;  %v4794_v48 = vmov (!%p3669_p6), 0.0|0.0  }
 0x209   : > { %v3168_v25 = vadd.f32 %v3167_v2, %v3166_v27  ;;  %v4473_v31 = vadd.f32 %v4421_v35, %v4221_v20  ;;  %v3022_v36 = vpop.f32.mrb[27].mxu0  ;;  %v3171_v45 = vsel %vm3116_vm5, %v3108_v18, 0.0  ;;  %v3153_v38 = vadd.f32 %v3152_v34, %v3151_v52  ;;  %4439 = vmatprep.subr.bf16.mxu0 (!%p3669_p6), %v4794_v48  ;;  %v3208_v2 = vld [vmem:[%s6086_s2 + $0x18] sm:$0xff] (!%p3669_p6) }
 0x20a   : > { %v3169_v32 = vsel %vm3116_vm5, %v3107_v19, 0.0  ;;  %v4474_v41 = vadd.f32 %v3022_v36, %v1906_v53  ;;  %v4440_v27 = vpack.c.bf16 (!%p3669_p6), %v3206_v22, %v3205_v56  ;;  %v4796_v18 = vmov (!%p3669_p6), 0.0  }
 0x20b   : > { %v3170_v40 = vadd.f32 %v3169_v32, %v3168_v25  ;;  %v3110_v30 = vmax.f32 %v4473_v31, 0.0  ;;  %v4224_v42 = vpop.f32.mrb[28].mxu1  ;;  %4436 = vmatprep.mubr.msk.f32.mxu0 (!%p3669_p6), %vm4795_vm8, %v4796_v18  ;;  %v4443_v19 = vpack.c.bf16 (!%p3669_p6), %v3208_v2, %v3207_v8  ;;  %v3670_v25 = vld [vmem:[%s6087_s3] ss:$0 sm:$0xff] (!%p3669_p6) }
 0x20c   : > { %v3109_v55 = vmax.f32 %v4474_v41, 0.0  ;;  %v4424_v29 = vpop.f32.mrb[28].mxu0  ;;  %v1916_v4 = vpop.f32.mrb[29].mxu1  ;;  %4441 = vmatpush3.bf16.msra.mxu0 (!%p3669_p6), %v4440_v27 }
 0x20d   : > { %v3172_v9 = vadd.f32 %v3171_v45, %v3170_v40  ;;  %v4475_v50 = vadd.f32 %v4424_v29, %v4224_v42  ;;  %v3032_v3 = vpop.f32.mrb[29].mxu0  ;;  %v3175_v7 = vsel %vm3116_vm5, %v3110_v30, 0.0  ;;  %4442 = vmatprep.subr.bf16.mxu0 (!%p3669_p6), %v4794_v48 }
 0x20e   : > { %v3173_v51 = vsel %vm3116_vm5, %v3109_v55, 0.0  ;;  %v4476_v59 = vadd.f32 %v3032_v3, %v1916_v4 }
 0x20f   : > { %v3174_v6 = vadd.f32 %v3173_v51, %v3172_v9  ;;  %v3112_v39 = vmax.f32 %v4475_v50, 0.0  ;;  %v4227_v0 = vpop.f32.mrb[30].mxu1 }
 0x210   : > { %v3111_v44 = vmax.f32 %v4476_v59, 0.0  ;;  %v4427_v60 = vpop.f32.mrb[30].mxu0  ;;  %v1926_v16 = vpop.f32.mrb[31].mxu1  ;;  %4444 = vmatpush3.bf16.msra.mxu0 (!%p3669_p6), %v4443_v19 }
 0x211   : > { %v3176_v46 = vadd.f32 %v3175_v7, %v3174_v6  ;;  %v4477_v14 = vadd.f32 %v4427_v60, %v4227_v0  ;;  %v3042_v23 = vpop.f32.mrb[31].mxu0  ;;  %v3179_v13 = vsel %vm3116_vm5, %v3112_v39, 0.0 }
 0x212   : > { %v3177_v10 = vsel %vm3116_vm5, %v3111_v44, 0.0  ;;  %v4478_v1 = vadd.f32 %v3042_v23, %v1926_v16 }
 0x213   : > { %v3178_v17 = vadd.f32 %v3177_v10, %v3176_v46  ;;  %v3114_v26 = vmax.f32 %v4477_v14, 0.0 }
 0x214   : > { %v3113_v33 = vmax.f32 %v4478_v1, 0.0 }
 0x215   : > { %v3180_v47 = vadd.f32 %v3179_v13, %v3178_v17  ;;  %v3183_v5 = vsel %vm3116_vm5, %v3114_v26, 0.0 }
 0x216   : > { %v3181_v43 = vsel %vm3116_vm5, %v3113_v33, 0.0 }
 0x217   : > { %v3182_v28 = vadd.f32 %v3181_v43, %v3180_v47 }
 0x219   : > { %v3184_v62 = vadd.f32 %v3183_v5, %v3182_v28 }
 0x21b   : > { %v3185_v61 = vrot.slane %v3184_v62, 4 }
 0x21d   : > { %v3186_v63 = vadd.f32 %v3185_v61, %v3184_v62 }
 0x21f   : > { %v3187_v57 = vrot.slane %v3186_v63, 2 }
 0x221   : > { %v3188_v24 = vadd.f32 %v3187_v57, %v3186_v63 }
 0x223   : > { %v3189_v49 = vrot.slane %v3188_v24, 1 }
 0x224   : > { %3202 = sbr.rel (%p3669_p6) target bundleno = 779 (0x30b), region = 44 }
 0x225   : > { %v3190_v15 = vadd.f32 %v3189_v49, %v3188_v24 }
 0x227   : > { %v3194_v58 = vsel %vm3193_vm6, %v3190_v15, %v3153_v38 }
 0x228   : > { %v3196_v21 = vadd.f32 %v3194_v58, %v3115_v37 }
 0x22a   : > { %3198 = vst.msk [vmem:[#allocation2] sm:$0x3] %vm3197_vm7, %v3196_v21 }
 0x231   : > { %v3203_v20 = vld [vmem:[#allocation2] sm:$0x3] }
 0x232   : > { %v3204_v35 = vmul.f32 0.00390625, %v3203_v20 }
 0x234   : > { %4437 = vmatmul.mubr.msk.f32.vlgmr.msra.gmra.mrb[0].mxu0 %vm3116_vm5, %v3204_v35 }
 0x307   : > { %v3285_v31 = vpop.f32.mrb[0].mxu0 }
 0x308   : > { %v3286_v53 = vadd.f32 %v3670_v25, %v3285_v31  ;;  %v4438_v36 = vpop.f32.mrb[1].mxu0 }
 0x30a   : > { %3289 = vst [vmem:[#allocation3] sm:$0x3] %v3286_v53 }
 0x30b PF: > { %p6049_p7 = scmp.eq.s32.totalorder %s3358_s18, 1  ;;  %s4797_s6 = smov [#allocation3]  }
 0x30c   : > { %s3299_s7 = sshll.u32 %s4797_s6, 4  ;;  %s3300_s7 = int_to_ptr.vmem [resolvable:$true] %s3299_s7 }
 0x30d   : > { %s4739_s8 = scalar_lea.vmem %s3300_s7, 32  ;;  %p4746_p11 = scmp.lt.s32.totalorder %s3300_s7, %s3300_s7 }
 0x30e   : > { %p4740_p8 = scmp.ne.s32.totalorder %s3300_s7, %s4739_s8  ;;  %p4747_p12 = scmp.lt.s32.totalorder %s4739_s8, %s4739_s8 }
 0x310   : > { %p4741_p9 = pnand %p4740_p8, %p6049_p7  ;;  %p4748_p13 = por %p4747_p12, %p4746_p11 }
 0x312   : > { %p4742_p10 = pneg %p4741_p9 }
 0x314   : > { %p4749_p0 = pnand %p4748_p13, %p4742_p10 }
 0x316   : > { %4752 = shalt.err (!%p4749_p0)
}
 0x317   : > { %s4753_s18 = scalar_lea.hbm %s6088_s4, 32 }
 0x318   : > { %p4754_p1 = scmp.ne.s32.totalorder %s6088_s4, %s4753_s18  ;;  %p4759_p4 = scmp.lt.u32.totalorder %s4753_s18, %s6088_s4 }
 0x31a   : > { %p4755_p2 = pnand %p4754_p1, %p6049_p7 }
 0x31c   : > { %p4756_p3 = pneg %p4755_p2 }
 0x31e   : > { %p4761_p5 = pnand %p4759_p4, %p4756_p3 }
 0x320   : > { %4764 = shalt.err (!%p4761_p5)
}
 0x321   : > { %4705 = dma.vmem_to_hbm [thread:$0]  (%p6049_p7), %s3300_s7, 32, %s6088_s4, [#allocation4]  }
 0x322   : > { %4778 = dma.done.wait (%p6049_p7), [#allocation4], 32  }
 0x323   : > { %4780 = vsyncadd (%p6049_p7), [#allocation4], 4294967264 }
 0x324 PF: > { %s15_s17 = sadd.s32 1, %s4791_s17   ;;  %s6266_s15 = smov %s4787_s16 }
 0x325   : > { %p12_p6 = scmp.ge.s32.totalorder %s15_s17, 4   ;;  %s6267_s16 = smov %s6269_s19 }
 0x327   :  { %14 = sbr.rel (!%p12_p6) target bundleno = 2 (0x2), region = 80 }
 0x32e   :  { %3312 = vsyncpa [#allocation4], 1 }
 0x32f   :  { %3314 = vsyncpa [#allocation4 + $0x1], 1 }

</bundles_post_ra>
